<compile_context>
chip_gen: v5e
topology: v5e:2x2
jax: 0.10.0
libtpu: 0.0.40
codegen_flags: <defaults>
</compile_context>

<pallas_src>
import functools

import jax
import jax.numpy as jnp
from jax.experimental import pallas as pl
from jax.experimental.pallas import tpu as pltpu

C_IN = 64    # fixed by the module (Conv1d(64, 128, 1))
C_MID = 128
C_OUT = 256  # `channels` default


def _output_kernel(x_ref, w1_ref, b1_ref, w2_ref, b2_ref, o_ref, *, chunk):
    # x_ref: (S, 64, tl) -- one batch element's skip-stack slab, channels-first.
    s = jnp.maximum(jnp.sum(x_ref[...].astype(jnp.float32), axis=0), 0.0)  # (64, tl)

    w1 = w1_ref[...]                         # (128, 64)  bf16
    b1 = b1_ref[...]                         # (128, 1)   f32
    w2 = w2_ref[...]                         # (256, 128) bf16
    b2 = b2_ref[...]                         # (256, 1)   f32

    tl = s.shape[-1]
    num_chunks = tl // chunk
    # Fused per-lane-chunk pipeline: keeps working set near the vreg file instead of
    # materializing (256, tl) intermediates and re-reading them from VMEM.
    for c in range(num_chunks):              # static trip count, static slices
        lo = c * chunk
        sc = s[:, lo:lo + chunk].astype(jnp.bfloat16)                 # (64, chunk)

        # conv1x1 #1: (128, 64) @ (64, chunk) + bias, bf16 operands / f32 acc
        h = jnp.dot(w1, sc, preferred_element_type=jnp.float32) + b1  # (128, chunk)
        h = jnp.maximum(h, 0.0).astype(jnp.bfloat16)                  # ReLU

        # conv1x1 #2: (256, 128) @ (128, chunk) + bias
        z = jnp.dot(w2, h, preferred_element_type=jnp.float32) + b2   # (256, chunk)

        # softmax over the channel axis (sublanes) == PyTorch dim=1 (exact divide).
        m = jnp.max(z, axis=0, keepdims=True)                         # (1, chunk)
        e = jnp.exp(z - m)                                            # (256, chunk)
        denom = jnp.sum(e, axis=0, keepdims=True)                     # (1, chunk)
        o_ref[:, lo:lo + chunk] = (e / denom).astype(o_ref.dtype)


def _pick_tl(S, L_pad128, vmem_budget_bytes):
    """Largest lane tile (multiple of 128, <= 2048) whose double-buffered
    input+output tiles fit the budget; or the full (128-padded) L if small."""
    per_col = 2 * (S * C_IN + C_OUT) * 4           # bytes per lane column (2 buffers)
    cap = max(128, (vmem_budget_bytes // per_col) // 128 * 128)
    cap = min(cap, 2048)
    if L_pad128 <= cap:
        return L_pad128                            # full-extent (lane-dense) block
    return cap                                     # multiple of 128; wrapper pads L


def _pick_chunk(tl):
    """Lane sub-chunk for the fused matmul+softmax epilogue (always divides tl)."""
    for c in (512, 256, 128):
        if tl % c == 0:
            return c
    return 128


@functools.partial(jax.jit, static_argnames=("tl", "vmem_budget_bytes", "out_dtype"))
def output_module(x, w1, b1, w2, b2, *, tl=None, vmem_budget_bytes=28 << 20,
                  out_dtype=jnp.float32):
    """x: [S, N, 64, L] float32; w1: [128, 64, 1]; b1: [128]; w2: [256, 128, 1];
    b2: [256]. Returns [N, 256, L] in `out_dtype` (PyTorch NCL). Set
    out_dtype=jnp.bfloat16 if the consumer accepts bf16 probabilities (cuts ~1/3 of
    the HBM write traffic)."""
    S, N, C, L = x.shape
    assert C == C_IN

    # Always pad L to a multiple of 128 so the output block is lane-dense.
    L_pad128 = pl.cdiv(L, 128) * 128
    if tl is None:
        tl = _pick_tl(S, L_pad128, vmem_budget_bytes)
    num_l = pl.cdiv(L_pad128, tl)
    L_pad = num_l * tl
    if L_pad != L:
        # zero-pad the length axis; padded columns are sliced off afterwards.
        x = jnp.pad(x, ((0, 0), (0, 0), (0, 0), (0, L_pad - L)))

    # Weights channels-first, bf16 operands (tiny params only; activations untouched).
    w1_bf = w1[:, :, 0].astype(jnp.bfloat16)    # (128, 64)
    w2_bf = w2[:, :, 0].astype(jnp.bfloat16)    # (256, 128)
    b1_c = b1.astype(jnp.float32).reshape(C_MID, 1)
    b2_c = b2.astype(jnp.float32).reshape(C_OUT, 1)

    out_bytes = jnp.dtype(out_dtype).itemsize
    weight_bytes = (C_MID * C_IN + C_OUT * C_MID) * 2 + (C_MID + C_OUT) * 4
    pipelined_bytes = 2 * (S * C_IN * 4 + C_OUT * out_bytes) * tl + 2 * weight_bytes
    # headroom for in-kernel intermediates (s tile + per-chunk h/z/e) + scratch
    vmem_limit = int(min(60 << 20, max(pipelined_bytes + (10 << 20), 20 << 20)))

    M = N * L_pad
    cost = pl.CostEstimate(
        flops=2 * M * (C_IN * C_MID + C_MID * C_OUT) + S * M * C_IN,
        transcendentals=M * C_OUT,
        bytes_accessed=S * M * C_IN * 4 + M * C_OUT * out_bytes + weight_bytes,
    )

    kernel = functools.partial(_output_kernel, chunk=_pick_chunk(tl))

    out = pl.pallas_call(
        kernel,
        out_shape=jax.ShapeDtypeStruct((N, C_OUT, L_pad), out_dtype),
        grid_spec=pltpu.PrefetchScalarGridSpec(
            num_scalar_prefetch=0,
            # lead with the (usually larger) length axis for a clean 2-TC split on v7x
            grid=(num_l, N),
            in_specs=[
                pl.BlockSpec((S, None, C_IN, tl), lambda l, n: (0, n, 0, l)),
                pl.BlockSpec((C_MID, C_IN), lambda l, n: (0, 0)),
                pl.BlockSpec((C_MID, 1), lambda l, n: (0, 0)),
                pl.BlockSpec((C_OUT, C_MID), lambda l, n: (0, 0)),
                pl.BlockSpec((C_OUT, 1), lambda l, n: (0, 0)),
            ],
            out_specs=pl.BlockSpec((None, C_OUT, tl), lambda l, n: (n, 0, l)),
        ),
        compiler_params=pltpu.CompilerParams(
            dimension_semantics=("parallel", "parallel"),
            vmem_limit_bytes=vmem_limit,
        ),
        cost_estimate=cost,
    )(x, w1_bf, b1_c, w2_bf, b2_c)

    if L_pad != L:
        out = out[:, :, :L]
    return out


def _reference_f32(x, w1, b1, w2, b2):
    """Pure-JAX f32 reference mirroring the PyTorch forward exactly."""
    out = jnp.sum(x, axis=0)                                   # [N, 64, L]
    out = jnp.maximum(out, 0.0)
    out = jnp.einsum("ncl,oc->nol", out, w1[:, :, 0]) + b1[None, :, None]
    out = jnp.maximum(out, 0.0)
    out = jnp.einsum("ncl,oc->nol", out, w2[:, :, 0]) + b2[None, :, None]
    return jax.nn.softmax(out, axis=1)                         # [N, 256, L]


def _reference_bf16_ops(x, w1, b1, w2, b2):
    """Reference with the same bf16-operand / f32-accumulate matmuls as the kernel."""
    s = jnp.maximum(jnp.sum(x, axis=0), 0.0)                   # [N, 64, L] f32
    h = jnp.einsum("ncl,oc->nol", s.astype(jnp.bfloat16),
                   w1[:, :, 0].astype(jnp.bfloat16),
                   preferred_element_type=jnp.float32) + b1[None, :, None]
    h = jnp.maximum(h, 0.0)
    z = jnp.einsum("ncl,oc->nol", h.astype(jnp.bfloat16),
                   w2[:, :, 0].astype(jnp.bfloat16),
                   preferred_element_type=jnp.float32) + b2[None, :, None]
    return jax.nn.softmax(z, axis=1)


if __name__ == "__main__":
    key = jax.random.PRNGKey(0)
    k_x, k_w1, k_b1, k_w2, k_b2 = jax.random.split(key, 5)

    # small shapes: stack S=8, batch N=2, C_in=64 (fixed by module), length L=256
    S, N, L = 8, 2, 256
    x = jax.random.normal(k_x, (S, N, C_IN, L), dtype=jnp.float32)

    # deterministic synthetic params (PyTorch Conv1d weight layout: [out, in, 1])
    w1 = jax.random.normal(k_w1, (C_MID, C_IN, 1), dtype=jnp.float32) * (1.0 / C_IN ** 0.5)
    b1 = jax.random.normal(k_b1, (C_MID,), dtype=jnp.float32) * 0.1
    w2 = jax.random.normal(k_w2, (C_OUT, C_MID, 1), dtype=jnp.float32) * (1.0 / C_MID ** 0.5)
    b2 = jax.random.normal(k_b2, (C_OUT,), dtype=jnp.float32) * 0.1

    y = jax.block_until_ready(output_module(x, w1, b1, w2, b2))
    assert y.shape == (N, C_OUT, L), y.shape

    # Tight check: kernel logic vs a reference using the same bf16-operand matmuls.
    y_bf_ref = _reference_bf16_ops(x, w1, b1, w2, b2)
    err_tight = float(jnp.max(jnp.abs(y - y_bf_ref)))
    assert err_tight < 5e-3, err_tight

    # Loose check: probabilities vs the exact f32 PyTorch-equivalent reference
    # (bf16 MXU operands => ~1e-2-scale relative drift on logits, softmax-damped).
    y_f32_ref = _reference_f32(x, w1, b1, w2, b2)
    err_loose = float(jnp.max(jnp.abs(y - y_f32_ref)))
    assert err_loose < 5e-2, err_loose

    print("KERNEL_OK")
</pallas_src>

<mosaic_0001>
module attributes {stable_mosaic.version = 11 : i64} {
  func.func @_output_kernel(%arg0: i32, %arg1: i32, %arg2: memref<8x1x64x256xf32, #tpu.memory_space<vmem>>, %arg3: memref<128x64xbf16, #tpu.memory_space<vmem>>, %arg4: memref<128x1xf32, #tpu.memory_space<vmem>>, %arg5: memref<256x128xbf16, #tpu.memory_space<vmem>>, %arg6: memref<256x1xf32, #tpu.memory_space<vmem>>, %arg7: memref<1x256x256xf32, #tpu.memory_space<vmem>>) attributes {dimension_semantics = [#tpu.dimension_semantics<parallel>, #tpu.dimension_semantics<parallel>], iteration_bounds = array<i64: 1, 2>, scalar_prefetch = 0 : i64, scratch_operands = 0 : i64, tpu.core_type = #tpu.core_type<tc>, window_params = [{transform_indices = @transform_0, window_bounds = array<i64: 8, 1, 64, 256>}, {pipeline_mode = #tpu.pipeline_mode<synchronous>, transform_indices = @transform_1, window_bounds = array<i64: 128, 64>}, {pipeline_mode = #tpu.pipeline_mode<synchronous>, transform_indices = @transform_2, window_bounds = array<i64: 128, 1>}, {pipeline_mode = #tpu.pipeline_mode<synchronous>, transform_indices = @transform_3, window_bounds = array<i64: 256, 128>}, {pipeline_mode = #tpu.pipeline_mode<synchronous>, transform_indices = @transform_4, window_bounds = array<i64: 256, 1>}, {transform_indices = @transform_5, window_bounds = array<i64: 1, 256, 256>}]} {
    %c0 = arith.constant 0 : index
    %c0_0 = arith.constant 0 : index
    %c0_1 = arith.constant 0 : index
    %c0_2 = arith.constant 0 : index
    %0 = vector.load %arg2[%c0, %c0_0, %c0_1, %c0_2] : memref<8x1x64x256xf32, #tpu.memory_space<vmem>>, vector<8x1x64x256xf32>
    %1 = vector.shape_cast %0 : vector<8x1x64x256xf32> to vector<8x64x256xf32>
    %cst = arith.constant dense<0.000000e+00> : vector<64x256xf32>
    %2 = vector.multi_reduction <add>, %1, %cst [0] : vector<8x64x256xf32> to vector<64x256xf32>
    %cst_3 = arith.constant 0.000000e+00 : f32
    %3 = vector.broadcast %cst_3 : f32 to vector<64x256xf32>
    %4 = arith.maximumf %2, %3 : vector<64x256xf32>
    %c0_4 = arith.constant 0 : index
    %c0_5 = arith.constant 0 : index
    %5 = vector.load %arg3[%c0_4, %c0_5] : memref<128x64xbf16, #tpu.memory_space<vmem>>, vector<128x64xbf16>
    %c0_6 = arith.constant 0 : index
    %c0_7 = arith.constant 0 : index
    %6 = vector.load %arg4[%c0_6, %c0_7] : memref<128x1xf32, #tpu.memory_space<vmem>>, vector<128x1xf32>
    %c0_8 = arith.constant 0 : index
    %c0_9 = arith.constant 0 : index
    %7 = vector.load %arg5[%c0_8, %c0_9] : memref<256x128xbf16, #tpu.memory_space<vmem>>, vector<256x128xbf16>
    %c0_10 = arith.constant 0 : index
    %c0_11 = arith.constant 0 : index
    %8 = vector.load %arg6[%c0_10, %c0_11] : memref<256x1xf32, #tpu.memory_space<vmem>>, vector<256x1xf32>
    %9 = arith.truncf %4 : vector<64x256xf32> to vector<64x256xbf16>
    %cst_12 = arith.constant dense<0.000000e+00> : vector<128x256xf32>
    %10 = tpu.matmul %5, %9, %cst_12 {dimension_numbers = #tpu.dot_dimension_numbers<[1], [0], [0], [1], [0, 0, 1, 1], [], []>} : vector<128x64xbf16>, vector<64x256xbf16>, vector<128x256xf32> -> vector<128x256xf32>
    %11 = vector.broadcast %6 : vector<128x1xf32> to vector<128x256xf32>
    %12 = arith.addf %10, %11 : vector<128x256xf32>
    %cst_13 = arith.constant 0.000000e+00 : f32
    %13 = vector.broadcast %cst_13 : f32 to vector<128x256xf32>
    %14 = arith.maximumf %12, %13 : vector<128x256xf32>
    %15 = arith.truncf %14 : vector<128x256xf32> to vector<128x256xbf16>
    %cst_14 = arith.constant dense<0.000000e+00> : vector<256x256xf32>
    %16 = tpu.matmul %7, %15, %cst_14 {dimension_numbers = #tpu.dot_dimension_numbers<[1], [0], [0], [1], [0, 0, 1, 1], [], []>} : vector<256x128xbf16>, vector<128x256xbf16>, vector<256x256xf32> -> vector<256x256xf32>
    %17 = vector.broadcast %8 : vector<256x1xf32> to vector<256x256xf32>
    %18 = arith.addf %16, %17 : vector<256x256xf32>
    %cst_15 = arith.constant dense<0xFF800000> : vector<256xf32>
    %19 = vector.multi_reduction <maximumf>, %18, %cst_15 [0] : vector<256x256xf32> to vector<256xf32>
    %20 = vector.shape_cast %19 : vector<256xf32> to vector<1x256xf32>
    %21 = vector.broadcast %20 : vector<1x256xf32> to vector<256x256xf32>
    %22 = arith.subf %18, %21 : vector<256x256xf32>
    %23 = math.exp %22 : vector<256x256xf32>
    %cst_16 = arith.constant dense<0.000000e+00> : vector<256xf32>
    %24 = vector.multi_reduction <add>, %23, %cst_16 [0] : vector<256x256xf32> to vector<256xf32>
    %25 = vector.shape_cast %24 : vector<256xf32> to vector<1x256xf32>
    %26 = vector.broadcast %25 : vector<1x256xf32> to vector<256x256xf32>
    %27 = arith.divf %23, %26 : vector<256x256xf32>
    %c0_17 = arith.constant 0 : index
    %c0_18 = arith.constant 0 : index
    %c0_19 = arith.constant 0 : index
    %28 = vector.load %arg7[%c0_17, %c0_18, %c0_19] : memref<1x256x256xf32, #tpu.memory_space<vmem>>, vector<1x256x256xf32>
    %29 = vector.shape_cast %28 : vector<1x256x256xf32> to vector<256x256xf32>
    %30 = vector.shape_cast %27 : vector<256x256xf32> to vector<1x256x256xf32>
    tpu.vector_store %arg7[%c0_17, %c0_18, %c0_19], %30 {strides = array<i32>} : memref<1x256x256xf32, #tpu.memory_space<vmem>>, vector<1x256x256xf32>,
    return
  }
  func.func @transform_0(%arg0: i32, %arg1: i32) -> (i32, i32, i32, i32) {
    %c0_i32 = arith.constant 0 : i32
    %c0_i32_0 = arith.constant 0 : i32
    %c0_i32_1 = arith.constant 0 : i32
    return %c0_i32, %arg1, %c0_i32_0, %arg0 : i32, i32, i32, i32
  }
  func.func @transform_1(%arg0: i32, %arg1: i32) -> (i32, i32) {
    %c0_i32 = arith.constant 0 : i32
    %c0_i32_0 = arith.constant 0 : i32
    %c0_i32_1 = arith.constant 0 : i32
    return %c0_i32, %c0_i32_0 : i32, i32
  }
  func.func @transform_2(%arg0: i32, %arg1: i32) -> (i32, i32) {
    %c0_i32 = arith.constant 0 : i32
    %c0_i32_0 = arith.constant 0 : i32
    %c0_i32_1 = arith.constant 0 : i32
    return %c0_i32, %c0_i32_0 : i32, i32
  }
  func.func @transform_3(%arg0: i32, %arg1: i32) -> (i32, i32) {
    %c0_i32 = arith.constant 0 : i32
    %c0_i32_0 = arith.constant 0 : i32
    %c0_i32_1 = arith.constant 0 : i32
    return %c0_i32, %c0_i32_0 : i32, i32
  }
  func.func @transform_4(%arg0: i32, %arg1: i32) -> (i32, i32) {
    %c0_i32 = arith.constant 0 : i32
    %c0_i32_0 = arith.constant 0 : i32
    %c0_i32_1 = arith.constant 0 : i32
    return %c0_i32, %c0_i32_0 : i32, i32
  }
  func.func @transform_5(%arg0: i32, %arg1: i32) -> (i32, i32, i32) {
    %c0_i32 = arith.constant 0 : i32
    %c0_i32_0 = arith.constant 0 : i32
    return %arg1, %c0_i32, %arg0 : i32, i32, i32
  }
}

</mosaic_0001>

<bundles_post_ra>
// kernel: output_module.1
= control target key start
LH: loop header
LB: loop body
LE: loop exit
PB: predicated region body
PF: predicated region fallthrough
CT: control target
= control target key end

     0   :  { %10 = vsyncpa [#allocation3], 0  ;;  %s3830_s0 = inlined_call_operand.hbm [shape: f32[8,2,64,256], index: 0, kind: input, shape index: {}]   ;;  %s3831_s1 = inlined_call_operand.vmem [shape: bf16[128,64], index: 1, kind: input, shape index: {}]   ;;  %s3832_s2 = inlined_call_operand.vmem [shape: f32[128,1], index: 2, kind: input, shape index: {}]   ;;  %s3833_s3 = inlined_call_operand.vmem [shape: bf16[256,128], index: 3, kind: input, shape index: {}]   ;;  %s3834_s4 = inlined_call_operand.vmem [shape: f32[256,1], index: 4, kind: input, shape index: {}]   ;;  %s3835_s5 = inlined_call_operand.hbm [shape: f32[2,256,256], index: 5, kind: output, shape index: {}]  }
   0x1   :  { %12 = vsyncpa [#allocation3 + $0x1], 0 }
   0x2   :  { %13 = vsyncpa [#allocation4], 0 }
   0x3   :  { %15 = vsyncpa [#allocation4 + $0x1], 0  ;;  %s2479_s18 = smov 0   ;;  %s2481_s19 = smov 0  }
   0x4   :  { %s2483_s20 = smov 0   ;;  %s2485_s21 = smov 0  }
   0x5   :  { %s2487_s22 = smov 0   ;;  %s2489_s23 = smov 0  }
   0x6 LB: > { %s1977_s24 = sadd.s32 4294967295, %s2438_s23   ;;  %s1978_s25 = sadd.s32 4294967294, %s2438_s23   ;;  %s2438_s23 = sphi %s2489_s23, %s21_s23   ;;  %s2434_s22 = sphi %s2487_s22, %s3996_s22   ;;  %s2430_s21 = sphi %s2485_s21, %s3995_s21   ;;  %s2426_s20 = sphi %s2483_s20, %s3994_s20   ;;  %s2422_s19 = sphi %s2481_s19, %s3993_s19   ;;  %s2418_s18 = sphi %s2479_s18, %s3992_s18  }
   0x7   : > { %s30_s26 = sadd.s32 1, %s2434_s22  ;;  %s42_s27 = sadd.s32 1, %s2426_s20 }
   0x8   : > { %p31_p0 = scmp.ge.s32.totalorder %s30_s26, 2  ;;  %p49_p1 = scmp.ne.s32.totalorder %s2426_s20, %s2422_s19 }
   0x9   : > { %p50_p2 = scmp.eq.s32.totalorder %s2438_s23, 0  ;;  %p55_p3 = scmp.ne.s32.totalorder %s2422_s19, %s2418_s18 }
   0xa   : > { %s3998_s26 = smov (%p31_p0, %s30_s26), 0  ;;  %p56_p5 = scmp.eq.s32.totalorder %s1977_s24, 0 }
   0xb   : > { %p2520_p4 = por %p50_p2, %p49_p1  ;;  %s37_s29 = ssub.s32 %s2434_s22, %s3998_s26 }
   0xc   : > { %p165_p6 = scmp.eq.s32.totalorder %s1977_s24, 1  ;;  %p40_p7 = scmp.eq.s32.totalorder %s37_s29, 0 }
   0xd   : > { %p2526_p8 = por %p56_p5, %p55_p3  ;;  %p171_p10 = scmp.eq.s32.totalorder %s1978_s25, 1 }
   0xe   : > { %p2530_p9 = por %p165_p6, %p49_p1  ;;  %p1980_p12 = scmp.ge.s32.totalorder %s2438_s23, 2 }
   0xf   : > { %s2535_s7 = scalar_select %p40_p7, %s2426_s20, %s42_s27  }
  0x10   : > { %p2537_p11 = por %p171_p10, %p55_p3  ;;  %199 = sbr.rel (%p1980_p12) target bundleno = 35 (0x23), region = 32 }
  0x15   : > { %s203_s9 = sand.u32 1, %s2426_s20   ;;  %s2106_s10 = sshll.u32 %s2434_s22, 7 }
  0x16   : > { %s1981_s11 = sshll.u32 %s203_s9, 10  ;;  %s214_s14 = scalar_lea.hbm %s3830_s0, %s2106_s10 }
  0x17   : > { %s2148_s15 = scalar_select %p2520_p4, [#allocation0], [#allocation8] }
  0x18   : > { %s227_s16 = sshll.u32 %s214_s14, 4  ;;  %s207_s17 = scalar_lea.vmem [#allocation2], %s1981_s11  ;;  %s228_s16 = int_to_ptr.hbm [resolvable:$true] %s227_s16 }
  0x19   : > { %s229_s24 = sshll.u32 %s207_s17, 4  ;;  %s219_s25 = sld [smem:[%s2148_s15]]   ;;  %s230_s24 = int_to_ptr.vmem [resolvable:$true] %s229_s24 }
  0x1a   : > { %s2440_s27 = smov 4096   ;;  %s2441_s29 = smov 2048  }
  0x1b   : > { %2149 = sst [smem:[#allocation7]] (%p2520_p4), %s2440_s27  ;;  %s2442_s12 = smov 8  }
  0x1c   : > { %2150 = sst [smem:[#allocation7 + $0x1]] (%p2520_p4), %s2441_s29  ;;  %s2443_s10 = smov 256  }
  0x1d   : > { %2151 = sst [smem:[#allocation7 + $0x2]] (%p2520_p4), %s2442_s12  ;;  %s2444_s14 = smov 16  }
  0x1e   : > { %2152 = sst [smem:[#allocation7 + $0x3]] (%p2520_p4), %s2443_s10  ;;  %s204_s15 = scalar_lea.sflag [#allocation3], %s203_s9 }
  0x1f   : > { %s1984_s13 = sshll.u32 %s219_s25, 26  ;;  %2153 = sst [smem:[#allocation7 + $0x4]] (%p2520_p4), %s2443_s10 }
  0x20   : > { %s1985_s11 = sadd.s32 134217728, %s1984_s13  ;;  %2154 = sst [smem:[#allocation7 + $0x5]] (%p2520_p4), %s2444_s14 }
  0x21   : > { %s2445_s17 = smov [#allocation6]  }
  0x22   : > { %2155 = dma.general (%p2520_p4), %s228_s16, 16384, %s230_s24, %s204_s15, %s2445_s17, [#allocation7], %s1985_s11, 0  }
  0x23 PF: > { %p1986_p13 = scmp.ge.s32.totalorder %s2438_s23, 1  ;;  %p250_p0 = scmp.lt.s32.totalorder %s2438_s23, 3 }
  0x25   : > { %p251_p1 = pnand %p1986_p13, %p250_p0 }
  0x27   : > { %254 = sbr.rel (%p251_p1) target bundleno = 900 (0x384), region = 40 }
  0x2c   : > { %s2568_s25 = sand.u32 1, %s2422_s19  }
  0x2d   : > { %s1987_s27 = sshll.u32 %s2568_s25, 10  ;;  %s257_s29 = scalar_lea.sflag [#allocation3], %s2568_s25 }
  0x2e   : > { %s2572_s12 = scalar_lea.vmem [#allocation2], %s1987_s27 }
  0x2f   : > { %2409 = dma.done.wait (%p2526_p8), %s257_s29, 16384  }
  0x30   : > { %2411 = vsyncadd (%p2526_p8), %s257_s29, 4294950912  ;;  %v2446_v0 = vmov 0   ;;  %v577_v1 = vld [vmem:[%s3832_s2 + $0x70] sm:$0xff]  ;;  %v303_v2 = vld [vmem:[%s2572_s12 + $0x60] sm:$0xff]  ;;  %vm771_vm0 = vcmask 523264   ;;  %s1988_s10 = sshll.u32 %s2568_s25, 9 }
  0x31   : > { %2221 = vset.pattern.permute.xlu0 %v2446_v0  ;;  %2223 = vset.pattern.permute.xlu2 %v2446_v0  ;;  %v305_v3 = vld [vmem:[%s2572_s12 + $0x70] sm:$0xff]  ;;  %v319_v4 = vld [vmem:[%s2572_s12 + $0xe0] sm:$0xff]  ;;  %v304_v18 = vld [vmem:[%s2572_s12 + $0x68] sm:$0xff]  ;;  %s3663_s13 = scalar_lea.vmem [#allocation5], %s1988_s10  ;;  %s2376_s16 = scalar_lea.hbm %s3835_s5, 1024 }
  0x32   : > { %2222 = vset.pattern.permute.xlu1 %v2446_v0  ;;  %723 = vperm.xlu0 %2221, %v577_v1   ;;  %v321_v5 = vld [vmem:[%s2572_s12 + $0xf0] sm:$0xff]  ;;  %v335_v6 = vld [vmem:[%s2572_s12 + $0x160] sm:$0xff]  ;;  %v503_v8 = vadd.f32 %v319_v4, %v303_v2  ;;  %v306_v21 = vld [vmem:[%s2572_s12 + $0x78] sm:$0xff]  ;;  %s1887_s17 = sshll.u32 %s3663_s13, 4  ;;  %s1888_s17 = int_to_ptr.vmem [resolvable:$true] %s1887_s17 }
  0x33   : > { %v337_v7 = vld [vmem:[%s2572_s12 + $0x170] sm:$0xff]  ;;  %v517_v9 = vadd.f32 %v321_v5, %v305_v3  ;;  %v351_v10 = vld [vmem:[%s2572_s12 + $0x1e0] sm:$0xff]  ;;  %v320_v22 = vld [vmem:[%s2572_s12 + $0xe8] sm:$0xff] }
  0x34   : > { %v353_v11 = vld [vmem:[%s2572_s12 + $0x1f0] sm:$0xff]  ;;  %v367_v12 = vld [vmem:[%s2572_s12 + $0x260] sm:$0xff]  ;;  %v504_v14 = vadd.f32 %v503_v8, %v335_v6  ;;  %v322_v23 = vld [vmem:[%s2572_s12 + $0xf8] sm:$0xff]  ;;  %v510_v27 = vadd.f32 %v320_v22, %v304_v18 }
  0x35   : > { %v369_v13 = vld [vmem:[%s2572_s12 + $0x270] sm:$0xff]  ;;  %v518_v15 = vadd.f32 %v517_v9, %v337_v7  ;;  %v383_v16 = vld [vmem:[%s2572_s12 + $0x2e0] sm:$0xff]  ;;  %v336_v25 = vld [vmem:[%s2572_s12 + $0x168] sm:$0xff]  ;;  %v524_v28 = vadd.f32 %v322_v23, %v306_v21 }
  0x36   : > { %v385_v17 = vld [vmem:[%s2572_s12 + $0x2f0] sm:$0xff]  ;;  %v505_v19 = vadd.f32 %v504_v14, %v351_v10  ;;  %v399_v24 = vld [vmem:[%s2572_s12 + $0x360] sm:$0xff]  ;;  %v338_v26 = vld [vmem:[%s2572_s12 + $0x178] sm:$0xff]  ;;  %v511_v37 = vadd.f32 %v510_v27, %v336_v25 }
  0x37   : > { %v519_v20 = vadd.f32 %v518_v15, %v353_v11  ;;  %v401_v29 = vld [vmem:[%s2572_s12 + $0x370] sm:$0xff]  ;;  %v352_v32 = vld [vmem:[%s2572_s12 + $0x1e8] sm:$0xff]  ;;  %v354_v33 = vld [vmem:[%s2572_s12 + $0x1f8] sm:$0xff]  ;;  %v525_v38 = vadd.f32 %v524_v28, %v338_v26 }
  0x38   : > { %v506_v30 = vadd.f32 %v505_v19, %v367_v12  ;;  %v415_v34 = vld [vmem:[%s2572_s12 + $0x3e0] sm:$0xff]  ;;  %v417_v35 = vld [vmem:[%s2572_s12 + $0x3f0] sm:$0xff]  ;;  %v368_v36 = vld [vmem:[%s2572_s12 + $0x268] sm:$0xff]  ;;  %v512_v44 = vadd.f32 %v511_v37, %v352_v32 }
  0x39   : > { %v520_v31 = vadd.f32 %v519_v20, %v369_v13  ;;  %v370_v41 = vld [vmem:[%s2572_s12 + $0x278] sm:$0xff]  ;;  %v384_v42 = vld [vmem:[%s2572_s12 + $0x2e8] sm:$0xff]  ;;  %v526_v45 = vadd.f32 %v525_v38, %v354_v33  ;;  %v299_v47 = vld [vmem:[%s2572_s12 + $0x40] sm:$0xff] }
  0x3a   : > { %v507_v39 = vadd.f32 %v506_v30, %v383_v16  ;;  %v386_v43 = vld [vmem:[%s2572_s12 + $0x2f8] sm:$0xff]  ;;  %v301_v48 = vld [vmem:[%s2572_s12 + $0x50] sm:$0xff]  ;;  %v315_v51 = vld [vmem:[%s2572_s12 + $0xc0] sm:$0xff]  ;;  %v513_v56 = vadd.f32 %v512_v44, %v368_v36 }
  0x3b   : > { %v521_v40 = vadd.f32 %v520_v31, %v385_v17  ;;  %v578_v46 = vld [vmem:[%s3832_s2 + $0x78] sm:$0xff]  ;;  %v317_v52 = vld [vmem:[%s2572_s12 + $0xd0] sm:$0xff]  ;;  %v331_v53 = vld [vmem:[%s2572_s12 + $0x140] sm:$0xff]  ;;  %v527_v57 = vadd.f32 %v526_v45, %v370_v41  ;;  %v475_v59 = vadd.f32 %v315_v51, %v299_v47 }
  0x3c   : > { %v508_v49 = vadd.f32 %v507_v39, %v399_v24  ;;  %728 = vperm.xlu0 %2221, %v578_v46   ;;  %v400_v54 = vld [vmem:[%s2572_s12 + $0x368] sm:$0xff]  ;;  %v402_v55 = vld [vmem:[%s2572_s12 + $0x378] sm:$0xff]  ;;  %v333_v58 = vld [vmem:[%s2572_s12 + $0x150] sm:$0xff]  ;;  %v489_v60 = vadd.f32 %v317_v52, %v301_v48  ;;  %v514_v3 = vadd.f32 %v513_v56, %v384_v42 }
  0x3d   : > { %v522_v50 = vadd.f32 %v521_v40, %v401_v29  ;;  %v416_v63 = vld [vmem:[%s2572_s12 + $0x3e8] sm:$0xff]  ;;  %v347_v0 = vld [vmem:[%s2572_s12 + $0x1c0] sm:$0xff]  ;;  %v349_v1 = vld [vmem:[%s2572_s12 + $0x1d0] sm:$0xff]  ;;  %v528_v4 = vadd.f32 %v527_v57, %v386_v43  ;;  %v476_v7 = vadd.f32 %v475_v59, %v331_v53 }
  0x3e   : > { %v509_v61 = vadd.f32 %v508_v49, %v415_v34  ;;  %v418_v2 = vld [vmem:[%s2572_s12 + $0x3f8] sm:$0xff]  ;;  %v363_v5 = vld [vmem:[%s2572_s12 + $0x240] sm:$0xff]  ;;  %v365_v6 = vld [vmem:[%s2572_s12 + $0x250] sm:$0xff]  ;;  %v490_v8 = vadd.f32 %v489_v60, %v333_v58  ;;  %v515_v14 = vadd.f32 %v514_v3, %v400_v54 }
  0x3f   : > { %v523_v62 = vadd.f32 %v522_v50, %v417_v35  ;;  %v379_v11 = vld [vmem:[%s2572_s12 + $0x2c0] sm:$0xff]  ;;  %v381_v12 = vld [vmem:[%s2572_s12 + $0x2d0] sm:$0xff]  ;;  %v300_v13 = vld [vmem:[%s2572_s12 + $0x48] sm:$0xff]  ;;  %v529_v15 = vadd.f32 %v528_v4, %v402_v55  ;;  %v477_v16 = vadd.f32 %v476_v7, %v347_v0 }
  0x40   : > { %v543_v9 = vmax.f32 %v509_v61, 0.0  ;;  %v491_v17 = vadd.f32 %v490_v8, %v349_v1  ;;  %v302_v18 = vld [vmem:[%s2572_s12 + $0x58] sm:$0xff]  ;;  %v316_v19 = vld [vmem:[%s2572_s12 + $0xc8] sm:$0xff]  ;;  %v395_v22 = vld [vmem:[%s2572_s12 + $0x340] sm:$0xff]  ;;  %v516_v27 = vadd.f32 %v515_v14, %v416_v63 }
  0x41   : > { %v545_v10 = vmax.f32 %v523_v62, 0.0  ;;  %v318_v20 = vld [vmem:[%s2572_s12 + $0xd8] sm:$0xff]  ;;  %v332_v23 = vld [vmem:[%s2572_s12 + $0x148] sm:$0xff]  ;;  %v482_v25 = vadd.f32 %v316_v19, %v300_v13  ;;  %v530_v28 = vadd.f32 %v529_v15, %v418_v2  ;;  %v397_v29 = vld [vmem:[%s2572_s12 + $0x350] sm:$0xff]  ;;  %v478_v30 = vadd.f32 %v477_v16, %v363_v5 }
  0x42   : > { %v334_v24 = vld [vmem:[%s2572_s12 + $0x158] sm:$0xff]  ;;  %v496_v26 = vadd.f32 %v318_v20, %v302_v18  ;;  %v492_v31 = vadd.f32 %v491_v17, %v365_v6  ;;  %v348_v32 = vld [vmem:[%s2572_s12 + $0x1c8] sm:$0xff]  ;;  %v411_v34 = vld [vmem:[%s2572_s12 + $0x3c0] sm:$0xff]  ;;  %v544_v39 = vmax.f32 %v516_v27, 0.0 }
  0x43   : > { %v649_v21 = vpack.c.bf16 %v545_v10, %v543_v9  ;;  %v350_v33 = vld [vmem:[%s2572_s12 + $0x1d8] sm:$0xff]  ;;  %v413_v35 = vld [vmem:[%s2572_s12 + $0x3d0] sm:$0xff]  ;;  %v364_v36 = vld [vmem:[%s2572_s12 + $0x248] sm:$0xff]  ;;  %v483_v37 = vadd.f32 %v482_v25, %v332_v23  ;;  %v546_v40 = vmax.f32 %v530_v28, 0.0  ;;  %v479_v41 = vadd.f32 %v478_v30, %v379_v11 }
  0x44   : > { %v497_v38 = vadd.f32 %v496_v26, %v334_v24  ;;  %v493_v42 = vadd.f32 %v492_v31, %v381_v12  ;;  %v366_v43 = vld [vmem:[%s2572_s12 + $0x258] sm:$0xff]  ;;  %v380_v44 = vld [vmem:[%s2572_s12 + $0x2c8] sm:$0xff]  ;;  %v295_v48 = vld [vmem:[%s2572_s12 + $0x20] sm:$0xff] }
  0x45   : > { %800 = vmatpush.bf16.msra.mxu0 %v649_v21  ;;  %v382_v45 = vld [vmem:[%s2572_s12 + $0x2d8] sm:$0xff]  ;;  %v484_v46 = vadd.f32 %v483_v37, %v348_v32  ;;  %v297_v49 = vld [vmem:[%s2572_s12 + $0x30] sm:$0xff]  ;;  %v311_v50 = vld [vmem:[%s2572_s12 + $0xa0] sm:$0xff]  ;;  %v650_v51 = vpack.c.bf16 %v546_v40, %v544_v39  ;;  %v480_v52 = vadd.f32 %v479_v41, %v395_v22 }
  0x46   : > { %v498_v47 = vadd.f32 %v497_v38, %v350_v33  ;;  %v494_v53 = vadd.f32 %v493_v42, %v397_v29  ;;  %v313_v54 = vld [vmem:[%s2572_s12 + $0xb0] sm:$0xff]  ;;  %v327_v55 = vld [vmem:[%s2572_s12 + $0x120] sm:$0xff]  ;;  %v447_v57 = vadd.f32 %v311_v50, %v295_v48  ;;  %v396_v58 = vld [vmem:[%s2572_s12 + $0x348] sm:$0xff] }
  0x47   : > { %v329_v56 = vld [vmem:[%s2572_s12 + $0x130] sm:$0xff]  ;;  %v398_v59 = vld [vmem:[%s2572_s12 + $0x358] sm:$0xff]  ;;  %v485_v60 = vadd.f32 %v484_v46, %v364_v36  ;;  %v343_v62 = vld [vmem:[%s2572_s12 + $0x1a0] sm:$0xff]  ;;  %v461_v63 = vadd.f32 %v313_v54, %v297_v49  ;;  %849 = vmatpush.bf16.msra.mxu1 %v650_v51  ;;  %v481_v0 = vadd.f32 %v480_v52, %v411_v34 }
  0x48   : > { %v499_v61 = vadd.f32 %v498_v47, %v366_v43  ;;  %v495_v1 = vadd.f32 %v494_v53, %v413_v35  ;;  %v412_v2 = vld [vmem:[%s2572_s12 + $0x3c8] sm:$0xff]  ;;  %v414_v3 = vld [vmem:[%s2572_s12 + $0x3d8] sm:$0xff]  ;;  %v345_v4 = vld [vmem:[%s2572_s12 + $0x1b0] sm:$0xff]  ;;  %v448_v5 = vadd.f32 %v447_v57, %v327_v55 }
  0x49   : > { %v486_v6 = vadd.f32 %v485_v60, %v380_v44  ;;  %v359_v8 = vld [vmem:[%s2572_s12 + $0x220] sm:$0xff]  ;;  %v361_v9 = vld [vmem:[%s2572_s12 + $0x230] sm:$0xff]  ;;  %v462_v11 = vadd.f32 %v461_v63, %v329_v56  ;;  %v539_v12 = vmax.f32 %v481_v0, 0.0  ;;  %v296_v16 = vld [vmem:[%s2572_s12 + $0x28] sm:$0xff] }
  0x4a   : > { %v500_v7 = vadd.f32 %v499_v61, %v382_v45  ;;  %v375_v10 = vld [vmem:[%s2572_s12 + $0x2a0] sm:$0xff]  ;;  %v541_v13 = vmax.f32 %v495_v1, 0.0  ;;  %v377_v14 = vld [vmem:[%s2572_s12 + $0x2b0] sm:$0xff]  ;;  %v449_v15 = vadd.f32 %v448_v5, %v343_v62  ;;  %v298_v17 = vld [vmem:[%s2572_s12 + $0x38] sm:$0xff] }
  0x4b   : > { %v487_v18 = vadd.f32 %v486_v6, %v396_v58  ;;  %v463_v20 = vadd.f32 %v462_v11, %v345_v4  ;;  %v312_v21 = vld [vmem:[%s2572_s12 + $0xa8] sm:$0xff]  ;;  %v314_v22 = vld [vmem:[%s2572_s12 + $0xb8] sm:$0xff]  ;;  %v391_v25 = vld [vmem:[%s2572_s12 + $0x320] sm:$0xff] }
  0x4c   : > { %v501_v19 = vadd.f32 %v500_v7, %v398_v59  ;;  %v328_v23 = vld [vmem:[%s2572_s12 + $0x128] sm:$0xff]  ;;  %v647_v24 = vpack.c.bf16 %v541_v13, %v539_v12  ;;  %v393_v26 = vld [vmem:[%s2572_s12 + $0x330] sm:$0xff]  ;;  %v450_v27 = vadd.f32 %v449_v15, %v359_v8  ;;  %v330_v28 = vld [vmem:[%s2572_s12 + $0x138] sm:$0xff]  ;;  %v454_v29 = vadd.f32 %v312_v21, %v296_v16 }
  0x4d   : > { %v468_v30 = vadd.f32 %v314_v22, %v298_v17  ;;  %v488_v31 = vadd.f32 %v487_v18, %v412_v2  ;;  %v407_v33 = vld [vmem:[%s2572_s12 + $0x3a0] sm:$0xff]  ;;  %v464_v34 = vadd.f32 %v463_v20, %v361_v9  ;;  %v344_v35 = vld [vmem:[%s2572_s12 + $0x1a8] sm:$0xff]  ;;  %v346_v36 = vld [vmem:[%s2572_s12 + $0x1b8] sm:$0xff] }
  0x4e   : > { %v502_v32 = vadd.f32 %v501_v19, %v414_v3  ;;  %801 = vmatpush.bf16.msra.mxu0 %v647_v24  ;;  %v409_v37 = vld [vmem:[%s2572_s12 + $0x3b0] sm:$0xff]  ;;  %v451_v38 = vadd.f32 %v450_v27, %v375_v10  ;;  %v360_v39 = vld [vmem:[%s2572_s12 + $0x228] sm:$0xff]  ;;  %v362_v40 = vld [vmem:[%s2572_s12 + $0x238] sm:$0xff]  ;;  %v455_v41 = vadd.f32 %v454_v29, %v328_v23 }
  0x4f   : > { %v469_v42 = vadd.f32 %v468_v30, %v330_v28  ;;  %v540_v43 = vmax.f32 %v488_v31, 0.0  ;;  %v465_v45 = vadd.f32 %v464_v34, %v377_v14  ;;  %v376_v46 = vld [vmem:[%s2572_s12 + $0x2a8] sm:$0xff]  ;;  %v378_v47 = vld [vmem:[%s2572_s12 + $0x2b8] sm:$0xff]  ;;  %v571_v48 = vld [vmem:[%s3832_s2 + $0x40] sm:$0xff] }
  0x50   : > { %v542_v44 = vmax.f32 %v502_v32, 0.0  ;;  %v452_v49 = vadd.f32 %v451_v38, %v391_v25  ;;  %v456_v50 = vadd.f32 %v455_v41, %v344_v35  ;;  %693 = vperm.xlu0 %2221, %v571_v48   ;;  %v291_v52 = vld [vmem:[%s2572_s12] sm:$0xff]  ;;  %v293_v53 = vld [vmem:[%s2572_s12 + $0x10] sm:$0xff]  ;;  %v392_v62 = vld [vmem:[%s2572_s12 + $0x328] sm:$0xff] }
  0x51   : > { %v470_v51 = vadd.f32 %v469_v42, %v346_v36  ;;  %v307_v54 = vld [vmem:[%s2572_s12 + $0x80] sm:$0xff]  ;;  %v466_v56 = vadd.f32 %v465_v45, %v393_v26  ;;  %v309_v57 = vld [vmem:[%s2572_s12 + $0x90] sm:$0xff]  ;;  %v394_v4 = vld [vmem:[%s2572_s12 + $0x338] sm:$0xff] }
  0x52   : > { %v648_v55 = vpack.c.bf16 %v542_v44, %v540_v43  ;;  %v323_v58 = vld [vmem:[%s2572_s12 + $0x100] sm:$0xff]  ;;  %v325_v59 = vld [vmem:[%s2572_s12 + $0x110] sm:$0xff]  ;;  %v419_v60 = vadd.f32 %v307_v54, %v291_v52  ;;  %v453_v61 = vadd.f32 %v452_v49, %v407_v33  ;;  %v457_v63 = vadd.f32 %v456_v50, %v360_v39  ;;  %v408_v5 = vld [vmem:[%s2572_s12 + $0x3a8] sm:$0xff] }
  0x53   : > { %v471_v0 = vadd.f32 %v470_v51, %v362_v40  ;;  %v339_v1 = vld [vmem:[%s2572_s12 + $0x180] sm:$0xff]  ;;  %v433_v2 = vadd.f32 %v309_v57, %v293_v53  ;;  %v467_v3 = vadd.f32 %v466_v56, %v409_v37  ;;  %v341_v6 = vld [vmem:[%s2572_s12 + $0x190] sm:$0xff]  ;;  %v410_v9 = vld [vmem:[%s2572_s12 + $0x3b8] sm:$0xff] }
  0x54   : > { %850 = vmatpush.bf16.msra.mxu1 %v648_v55  ;;  %v420_v7 = vadd.f32 %v419_v60, %v323_v58  ;;  %v535_v8 = vmax.f32 %v453_v61, 0.0  ;;  %v458_v10 = vadd.f32 %v457_v63, %v376_v46  ;;  %v355_v12 = vld [vmem:[%s2572_s12 + $0x200] sm:$0xff]  ;;  %v357_v13 = vld [vmem:[%s2572_s12 + $0x210] sm:$0xff]  ;;  %v292_v18 = vld [vmem:[%s2572_s12 + $0x8] sm:$0xff] }
  0x55   : > { %v472_v11 = vadd.f32 %v471_v0, %v378_v47  ;;  %v434_v14 = vadd.f32 %v433_v2, %v325_v59  ;;  %v537_v15 = vmax.f32 %v467_v3, 0.0  ;;  %v371_v16 = vld [vmem:[%s2572_s12 + $0x280] sm:$0xff]  ;;  %v294_v19 = vld [vmem:[%s2572_s12 + $0x18] sm:$0xff]  ;;  %v308_v23 = vld [vmem:[%s2572_s12 + $0x88] sm:$0xff] }
  0x56   : > { %v421_v17 = vadd.f32 %v420_v7, %v339_v1  ;;  %v459_v20 = vadd.f32 %v458_v10, %v392_v62  ;;  %v310_v24 = vld [vmem:[%s2572_s12 + $0x98] sm:$0xff]  ;;  %v324_v25 = vld [vmem:[%s2572_s12 + $0x108] sm:$0xff]  ;;  %v373_v27 = vld [vmem:[%s2572_s12 + $0x290] sm:$0xff]  ;;  %v426_v30 = vadd.f32 %v308_v23, %v292_v18 }
  0x57   : > { %v473_v21 = vadd.f32 %v472_v11, %v394_v4  ;;  %v435_v22 = vadd.f32 %v434_v14, %v341_v6  ;;  %v645_v26 = vpack.c.bf16 %v537_v15, %v535_v8  ;;  %v326_v29 = vld [vmem:[%s2572_s12 + $0x118] sm:$0xff]  ;;  %v440_v31 = vadd.f32 %v310_v24, %v294_v19  ;;  %v387_v34 = vld [vmem:[%s2572_s12 + $0x300] sm:$0xff]  ;;  %v340_v36 = vld [vmem:[%s2572_s12 + $0x188] sm:$0xff] }
  0x58   : > { %v422_v28 = vadd.f32 %v421_v17, %v355_v12  ;;  %v460_v32 = vadd.f32 %v459_v20, %v408_v5  ;;  %v342_v37 = vld [vmem:[%s2572_s12 + $0x198] sm:$0xff]  ;;  %v389_v38 = vld [vmem:[%s2572_s12 + $0x310] sm:$0xff]  ;;  %v403_v39 = vld [vmem:[%s2572_s12 + $0x380] sm:$0xff]  ;;  %v427_v41 = vadd.f32 %v426_v30, %v324_v25 }
  0x59   : > { %v474_v33 = vadd.f32 %v473_v21, %v410_v9  ;;  %v436_v35 = vadd.f32 %v435_v22, %v357_v13  ;;  %802 = vmatpush.bf16.msra.mxu0 %v645_v26  ;;  %v441_v42 = vadd.f32 %v440_v31, %v326_v29  ;;  %v405_v45 = vld [vmem:[%s2572_s12 + $0x390] sm:$0xff]  ;;  %v356_v47 = vld [vmem:[%s2572_s12 + $0x208] sm:$0xff]  ;;  %v358_v48 = vld [vmem:[%s2572_s12 + $0x218] sm:$0xff] }
  0x5a   : > { %v423_v40 = vadd.f32 %v422_v28, %v371_v16  ;;  %v536_v43 = vmax.f32 %v460_v32, 0.0  ;;  %v428_v50 = vadd.f32 %v427_v41, %v340_v36  ;;  %v575_v52 = vld [vmem:[%s3832_s2 + $0x60] sm:$0xff]  ;;  %v573_v53 = vld [vmem:[%s3832_s2 + $0x50] sm:$0xff]  ;;  %v570_v54 = vld [vmem:[%s3832_s2 + $0x38] sm:$0xff] }
  0x5b   : > { %v538_v44 = vmax.f32 %v474_v33, 0.0  ;;  %v437_v46 = vadd.f32 %v436_v35, %v373_v27  ;;  %v442_v51 = vadd.f32 %v441_v42, %v342_v37  ;;  %v372_v57 = vld [vmem:[%s2572_s12 + $0x288] sm:$0xff]  ;;  %v374_v58 = vld [vmem:[%s2572_s12 + $0x298] sm:$0xff]  ;;  %713 = vperm.xlu1 %2222, %v575_v52   ;;  %703 = vperm.xlu2 %2223, %v573_v53   ;;  %v565_v12 = vld [vmem:[%s3832_s2 + $0x10] sm:$0xff] }
  0x5c   : > { %v424_v49 = vadd.f32 %v423_v40, %v387_v34  ;;  %v429_v60 = vadd.f32 %v428_v50, %v356_v47  ;;  %688 = vperm.xlu0 %2221, %v570_v54   ;;  %v388_v63 = vld [vmem:[%s2572_s12 + $0x308] sm:$0xff]  ;;  %v390_v0 = vld [vmem:[%s2572_s12 + $0x318] sm:$0xff]  ;;  %v2107_v15 = vld [vmem:[%s3831_s1] sm:$0xff] }
  0x5d   : > { %v646_v55 = vpack.c.bf16 %v538_v44, %v536_v43  ;;  %v438_v56 = vadd.f32 %v437_v46, %v389_v38  ;;  %v443_v61 = vadd.f32 %v442_v51, %v358_v48  ;;  %v404_v5 = vld [vmem:[%s2572_s12 + $0x388] sm:$0xff]  ;;  %v406_v6 = vld [vmem:[%s2572_s12 + $0x398] sm:$0xff]  ;;  %v569_v20 = vld [vmem:[%s3832_s2 + $0x30] sm:$0xff]  ;;  %s2131_s12 = sshll.u32 %s2430_s21, 9  ;;  %s1873_s21 = scalar_lea.sflag [#allocation4], %s2568_s25 }
  0x5e   : > { %v425_v59 = vadd.f32 %v424_v49, %v403_v39  ;;  %v430_v2 = vadd.f32 %v429_v60, %v372_v57  ;;  %v576_v9 = vld [vmem:[%s3832_s2 + $0x68] sm:$0xff]  ;;  %v574_v11 = vld [vmem:[%s3832_s2 + $0x58] sm:$0xff]  ;;  %v567_v22 = vld [vmem:[%s3832_s2 + $0x20] sm:$0xff]  ;;  %s1886_s15 = scalar_lea.hbm %s3835_s5, %s2131_s12 }
  0x5f   : > { %851 = vmatpush.bf16.msra.mxu1 %v646_v55  ;;  %v439_v62 = vadd.f32 %v438_v56, %v405_v45  ;;  %v444_v3 = vadd.f32 %v443_v61, %v374_v58  ;;  %v572_v19 = vld [vmem:[%s3832_s2 + $0x48] sm:$0xff]  ;;  %v613_v24 = vld [vmem:[%s3834_s4 + $0x10] sm:$0xff]  ;;  %v566_v26 = vld [vmem:[%s3832_s2 + $0x18] sm:$0xff]  ;;  %s1889_s27 = sshll.u32 %s1886_s15, 4  ;;  %s1890_s27 = int_to_ptr.hbm [resolvable:$true] %s1889_s27 }
  0x60   : > { %v531_v1 = vmax.f32 %v425_v59, 0.0  ;;  %v431_v7 = vadd.f32 %v430_v2, %v388_v63  ;;  %v564_v21 = vld [vmem:[%s3832_s2 + $0x8] sm:$0xff]  ;;  %v563_v27 = vld [vmem:[%s3832_s2] sm:$0xff]  ;;  %v2109_v31 = vld [vmem:[%s3831_s1 + $0x10] sm:$0xff]  ;;  %s2370_s29 = sshra.s32 %s1890_s27, 4  ;;  %s2371_s29 = int_to_ptr.hbm [resolvable:$true] %s2370_s29 }
  0x61   : > { %v533_v4 = vmax.f32 %v439_v62, 0.0  ;;  %v445_v8 = vadd.f32 %v444_v3, %v390_v0  ;;  %v568_v23 = vld [vmem:[%s3832_s2 + $0x28] sm:$0xff]  ;;  %v611_v29 = vld [vmem:[%s3834_s4] sm:$0xff]  ;;  %v614_v32 = vld [vmem:[%s3834_s4 + $0x18] sm:$0xff]  ;;  %s2372_s28 = scalar_lea.hbm %s2371_s29, 512  ;;  %p2377_p5 = scmp.lt.s32.totalorder %s2371_s29, %s3835_s5 }
  0x62   : > { %v432_v13 = vadd.f32 %v431_v7, %v404_v5  ;;  %v2108_v25 = vld [vmem:[%s3831_s1 + $0x8] sm:$0xff]  ;;  %v619_v30 = vld [vmem:[%s3834_s4 + $0x40] sm:$0xff]  ;;  %v622_v33 = vld [vmem:[%s3834_s4 + $0x58] sm:$0xff]  ;;  %p2373_p2 = scmp.ne.s32.totalorder %s2371_s29, %s2372_s28  ;;  %p2378_p6 = scmp.lt.s32.totalorder %s2376_s16, %s2372_s28 }
  0x63   : > { %v643_v10 = vpack.c.bf16 %v533_v4, %v531_v1  ;;  %v446_v14 = vadd.f32 %v445_v8, %v406_v6  ;;  %718 = vperm.xlu1 %2222, %v576_v9   ;;  %708 = vperm.xlu2 %2223, %v574_v11   ;;  %v616_v28 = vld [vmem:[%s3834_s4 + $0x28] sm:$0xff]  ;;  %v617_v35 = vld [vmem:[%s3834_s4 + $0x30] sm:$0xff]  ;;  %v615_v37 = vld [vmem:[%s3834_s4 + $0x20] sm:$0xff] }
  0x64   : > { %v532_v16 = vmax.f32 %v432_v13, 0.0  ;;  %663 = vperm.xlu0 %2221, %v565_v12   ;;  %v612_v34 = vld [vmem:[%s3834_s4 + $0x8] sm:$0xff]  ;;  %v625_v36 = vld [vmem:[%s3834_s4 + $0x70] sm:$0xff]  ;;  %v2110_v38 = vld [vmem:[%s3831_s1 + $0x18] sm:$0xff]  ;;  %p2374_p3 = pnand %p2373_p2, %p2530_p9  ;;  %p2379_p7 = por %p2378_p6, %p2377_p5 }
  0x65   : > { %803 = vmatpush.bf16.msra.mxu0 %v643_v10  ;;  %v534_v17 = vmax.f32 %v446_v14, 0.0  ;;  %v620_v39 = vld [vmem:[%s3834_s4 + $0x48] sm:$0xff]  ;;  %v618_v41 = vld [vmem:[%s3834_s4 + $0x38] sm:$0xff]  ;;  %v623_v42 = vld [vmem:[%s3834_s4 + $0x60] sm:$0xff] }
  0x66   : > { %v628_v40 = vld [vmem:[%s3834_s4 + $0x88] sm:$0xff]  ;;  %v631_v43 = vld [vmem:[%s3834_s4 + $0xa0] sm:$0xff]  ;;  %v621_v44 = vld [vmem:[%s3834_s4 + $0x50] sm:$0xff]  ;;  %p2375_p4 = pneg %p2374_p3 }
  0x67   : > { %v644_v18 = vpack.c.bf16 %v534_v17, %v532_v16  ;;  %v2111_v45 = vld [vmem:[%s3831_s1 + $0x20] sm:$0xff]  ;;  %v626_v46 = vld [vmem:[%s3834_s4 + $0x78] sm:$0xff]  ;;  %v624_v48 = vld [vmem:[%s3834_s4 + $0x68] sm:$0xff] }
  0x68   : > { %2021 = vmatmul.msk.bf16.vlgmr.msra.gmra.mxu0 %vm771_vm0, %v2107_v15  ;;  %v634_v47 = vld [vmem:[%s3834_s4 + $0xb8] sm:$0xff]  ;;  %v629_v49 = vld [vmem:[%s3834_s4 + $0x90] sm:$0xff]  ;;  %v627_v51 = vld [vmem:[%s3834_s4 + $0x80] sm:$0xff]  ;;  %p2380_p8 = pnand %p2379_p7, %p2375_p4 }
  0x69   : > { %852 = vmatpush.bf16.msra.mxu1 %v644_v18  ;;  %v637_v50 = vld [vmem:[%s3834_s4 + $0xd0] sm:$0xff]  ;;  %v2112_v52 = vld [vmem:[%s3831_s1 + $0x28] sm:$0xff]  ;;  %v630_v56 = vld [vmem:[%s3834_s4 + $0x98] sm:$0xff] }
  0x6a   : > { %v632_v54 = vld [vmem:[%s3834_s4 + $0xa8] sm:$0xff]  ;;  %v635_v58 = vld [vmem:[%s3834_s4 + $0xc0] sm:$0xff]  ;;  %v2113_v60 = vld [vmem:[%s3831_s1 + $0x30] sm:$0xff] }
  0x6b   : > { %698 = vperm.xlu1 %2222, %v572_v19   ;;  %683 = vperm.xlu2 %2223, %v569_v20   ;;  %v640_v55 = vld [vmem:[%s3834_s4 + $0xe8] sm:$0xff]  ;;  %v638_v61 = vld [vmem:[%s3834_s4 + $0xd8] sm:$0xff]  ;;  %v633_v63 = vld [vmem:[%s3834_s4 + $0xb0] sm:$0xff] }
  0x6c   : > { %2029 = vmatmul.msk.bf16.vlgmr.msra.gmra.mxu1 %vm771_vm0, %v2107_v15  ;;  %658 = vperm.xlu0 %2221, %v564_v21   ;;  %v641_v1 = vld [vmem:[%s3834_s4 + $0xf0] sm:$0xff]  ;;  %v636_v3 = vld [vmem:[%s3834_s4 + $0xc8] sm:$0xff]  ;;  %v2114_v4 = vld [vmem:[%s3831_s1 + $0x38] sm:$0xff] }
  0x6d   : > { %v639_v7 = vld [vmem:[%s3834_s4 + $0xe0] sm:$0xff]  ;;  %v642_v11 = vld [vmem:[%s3834_s4 + $0xf8] sm:$0xff] }
  0x73   : > { %673 = vperm.xlu1 %2222, %v567_v22   ;;  %678 = vperm.xlu2 %2223, %v568_v23  }
  0x74   : > { %954 = vperm.xlu0 %2221, %v613_v24  }
  0x78   : > { %2022 = vmatmul.msk.bf16.gmra.mxu0 %vm771_vm0, %v2108_v25 }
  0x7b   : > { %668 = vperm.xlu1 %2222, %v566_v26   ;;  %653 = vperm.xlu2 %2223, %v563_v27  }
  0x7c   : > { %2030 = vmatmul.msk.bf16.gmra.mxu1 %vm771_vm0, %v2108_v25  ;;  %969 = vperm.xlu0 %2221, %v616_v28  }
  0x83   : > { %944 = vperm.xlu1 %2222, %v611_v29   ;;  %949 = vperm.xlu2 %2223, %v612_v34  }
  0x84   : > { %984 = vperm.xlu0 %2221, %v619_v30  }
  0x88   : > { %2023 = vmatmul.msk.bf16.gmra.mxu0 %vm771_vm0, %v2109_v31 }
  0x8b   : > { %959 = vperm.xlu1 %2222, %v614_v32   ;;  %964 = vperm.xlu2 %2223, %v615_v37  }
  0x8c   : > { %2031 = vmatmul.msk.bf16.gmra.mxu1 %vm771_vm0, %v2109_v31  ;;  %999 = vperm.xlu0 %2221, %v622_v33  }
  0x93   : > { %974 = vperm.xlu1 %2222, %v617_v35   ;;  %979 = vperm.xlu2 %2223, %v618_v41  }
  0x94   : > { %1014 = vperm.xlu0 %2221, %v625_v36  }
  0x98   : > { %2024 = vmatmul.msk.bf16.gmra.mxu0 %vm771_vm0, %v2110_v38 }
  0x9b   : > { %989 = vperm.xlu1 %2222, %v620_v39   ;;  %994 = vperm.xlu2 %2223, %v621_v44  }
  0x9c   : > { %2032 = vmatmul.msk.bf16.gmra.mxu1 %vm771_vm0, %v2110_v38  ;;  %1029 = vperm.xlu0 %2221, %v628_v40  }
  0xa3   : > { %1004 = vperm.xlu1 %2222, %v623_v42   ;;  %1009 = vperm.xlu2 %2223, %v624_v48  }
  0xa4   : > { %1044 = vperm.xlu0 %2221, %v631_v43   ;;  %v2849_v53 = vpop.permute.xlu0 %723 }
  0xa8   : > { %2025 = vmatmul.msk.bf16.gmra.mxu0 %vm771_vm0, %v2111_v45 }
  0xab   : > { %1019 = vperm.xlu1 %2222, %v626_v46   ;;  %1024 = vperm.xlu2 %2223, %v627_v51  }
  0xac   : > { %2033 = vmatmul.msk.bf16.gmra.mxu1 %vm771_vm0, %v2111_v45  ;;  %1059 = vperm.xlu0 %2221, %v634_v47  }
  0xae   : > { %v2866_v59 = vpop.permute.xlu0 %728 }
  0xb3   : > { %1034 = vperm.xlu1 %2222, %v629_v49   ;;  %1039 = vperm.xlu2 %2223, %v630_v56  }
  0xb4   : > { %1074 = vperm.xlu0 %2221, %v637_v50  }
  0xb5   : > { %v2861_v57 = vpop.permute.xlu2 %703 }
  0xb8   : > { %2026 = vmatmul.msk.bf16.gmra.mxu0 %vm771_vm0, %v2112_v52 }
  0xbb   : > { %1049 = vperm.xlu1 %2222, %v632_v54   ;;  %1054 = vperm.xlu2 %2223, %v633_v63  }
  0xbc   : > { %2034 = vmatmul.msk.bf16.gmra.mxu1 %vm771_vm0, %v2112_v52  ;;  %1089 = vperm.xlu0 %2221, %v640_v55  }
  0xbd   : > { %v2875_v62 = vpop.permute.xlu2 %708 }
  0xc2   : > { %v2881_v0 = vpop.permute.xlu0 %693 }
  0xc3   : > { %1064 = vperm.xlu1 %2222, %v635_v58   ;;  %1069 = vperm.xlu2 %2223, %v636_v3  }
  0xc5   : > { %v2894_v5 = vpop.permute.xlu2 %683 }
  0xc8   : > { %2027 = vmatmul.msk.bf16.gmra.mxu0 %vm771_vm0, %v2113_v60 }
  0xcb   : > { %1079 = vperm.xlu1 %2222, %v638_v61   ;;  %1084 = vperm.xlu2 %2223, %v639_v7  }
  0xcc   : > { %2035 = vmatmul.msk.bf16.gmra.mxu1 %vm771_vm0, %v2113_v60 }
  0xcd   : > { %v2886_v2 = vpop.permute.xlu1 %713  ;;  %v679_v9 = vpop.permute.xlu2 %678 }
  0xce   : > { %v2896_v6 = vpop.permute.xlu0 %688 }
  0xd3   : > { %1094 = vperm.xlu1 %2222, %v641_v1   ;;  %1099 = vperm.xlu2 %2223, %v642_v11  }
  0xd5   : > { %v2903_v8 = vpop.permute.xlu1 %718  ;;  %v654_v14 = vpop.permute.xlu2 %653 }
  0xd6   : > { %v664_v10 = vpop.permute.xlu0 %663 }
  0xd8   : > { %2028 = vmatmul.msk.bf16.gmra.mxu0 %vm771_vm0, %v2114_v4 }
  0xdc   : > { %2036 = vmatmul.msk.bf16.gmra.mxu1 %vm771_vm0, %v2114_v4 }
  0xdd   : > { %v2908_v13 = vpop.permute.xlu1 %698 }
  0xde   : > { %v659_v16 = vpop.permute.xlu0 %658 }
  0xe5   : > { %v805_v12 = vpop.f32.mrf.mxu0  ;;  %v674_v23 = vpop.permute.xlu1 %673 }
  0xe6   : > { %v806_v17 = vadd.f32 %v805_v12, %v654_v14 }
  0xe8   : > { %v894_v20 = vmax.f32 %v806_v17, 0.0 }
  0xe9   : > { %v854_v15 = vpop.f32.mrf.mxu1 }
  0xea   : > { %v855_v22 = vadd.f32 %v854_v15, %v654_v14 }
  0xec   : > { %v895_v27 = vmax.f32 %v855_v22, 0.0 }
  0xed   : > { %v807_v18 = vpop.f32.mrf.mxu0  ;;  %v669_v32 = vpop.permute.xlu1 %668 }
  0xee   : > { %v808_v19 = vadd.f32 %v807_v18, %v659_v16 }
  0xf0   : > { %v896_v21 = vmax.f32 %v808_v19, 0.0 }
  0xf1   : > { %v856_v24 = vpop.f32.mrf.mxu1 }
  0xf2   : > { %v2910_v25 = vpack.c.bf16 %v896_v21, %v894_v20  ;;  %v857_v26 = vadd.f32 %v856_v24, %v659_v16 }
  0xf4   : > { %v897_v28 = vmax.f32 %v857_v26, 0.0 }
  0xf5   : > { %v810_v29 = vpop.f32.mrf.mxu0 }
  0xf6   : > { %v2912_v30 = vpack.c.bf16 %v897_v28, %v895_v27  ;;  %v811_v33 = vadd.f32 %v810_v29, %v664_v10 }
  0xf8   : > { %v898_v36 = vmax.f32 %v811_v33, 0.0 }
  0xf9   : > { %v859_v31 = vpop.f32.mrf.mxu1 }
  0xfa   : > { %v860_v38 = vadd.f32 %v859_v31, %v664_v10 }
  0xfc   : > { %v899_v42 = vmax.f32 %v860_v38, 0.0 }
  0xfd   : > { %v812_v34 = vpop.f32.mrf.mxu0 }
  0xfe   : > { %v813_v35 = vadd.f32 %v812_v34, %v669_v32 }
 0x100   : > { %v900_v37 = vmax.f32 %v813_v35, 0.0 }
 0x101   : > { %v861_v39 = vpop.f32.mrf.mxu1 }
 0x102   : > { %v2914_v40 = vpack.c.bf16 %v900_v37, %v898_v36  ;;  %v862_v41 = vadd.f32 %v861_v39, %v669_v32 }
 0x104   : > { %v901_v43 = vmax.f32 %v862_v41, 0.0 }
 0x105   : > { %v815_v44 = vpop.f32.mrf.mxu0 }
 0x106   : > { %v2916_v45 = vpack.c.bf16 %v901_v43, %v899_v42  ;;  %v816_v47 = vadd.f32 %v815_v44, %v674_v23 }
 0x108   : > { %v902_v50 = vmax.f32 %v816_v47, 0.0 }
 0x109   : > { %v864_v46 = vpop.f32.mrf.mxu1 }
 0x10a   : > { %v865_v52 = vadd.f32 %v864_v46, %v674_v23 }
 0x10c   : > { %v903_v58 = vmax.f32 %v865_v52, 0.0 }
 0x10d   : > { %v817_v48 = vpop.f32.mrf.mxu0 }
 0x10e   : > { %v818_v49 = vadd.f32 %v817_v48, %v679_v9 }
 0x110   : > { %v904_v51 = vmax.f32 %v818_v49, 0.0 }
 0x111   : > { %v866_v54 = vpop.f32.mrf.mxu1 }
 0x112   : > { %v2918_v55 = vpack.c.bf16 %v904_v51, %v902_v50  ;;  %v867_v56 = vadd.f32 %v866_v54, %v679_v9 }
 0x114   : > { %v905_v60 = vmax.f32 %v867_v56, 0.0 }
 0x115   : > { %v820_v61 = vpop.f32.mrf.mxu0 }
 0x116   : > { %v2920_v63 = vpack.c.bf16 %v905_v60, %v903_v58  ;;  %v821_v3 = vadd.f32 %v820_v61, %v2894_v5 }
 0x118   : > { %v906_v10 = vmax.f32 %v821_v3, 0.0 }
 0x119   : > { %v869_v1 = vpop.f32.mrf.mxu1 }
 0x11a   : > { %v870_v12 = vadd.f32 %v869_v1, %v2894_v5 }
 0x11c   : > { %v907_v16 = vmax.f32 %v870_v12, 0.0 }
 0x11d   : > { %v822_v4 = vpop.f32.mrf.mxu0 }
 0x11e   : > { %v823_v7 = vadd.f32 %v822_v4, %v2896_v6 }
 0x120   : > { %v908_v11 = vmax.f32 %v823_v7, 0.0 }
 0x121   : > { %v871_v14 = vpop.f32.mrf.mxu1 }
 0x122   : > { %v2925_v15 = vpack.c.bf16 %v908_v11, %v906_v10  ;;  %v872_v9 = vadd.f32 %v871_v14, %v2896_v6 }
 0x124   : > { %v909_v17 = vmax.f32 %v872_v9, 0.0 }
 0x125   : > { %v825_v18 = vpop.f32.mrf.mxu0 }
 0x126   : > { %v2928_v19 = vpack.c.bf16 %v909_v17, %v907_v16 }
 0x129   : > { %v874_v20 = vpop.f32.mrf.mxu1 }
 0x12d   : > { %v827_v21 = vpop.f32.mrf.mxu0 }
 0x131   : > { %v876_v22 = vpop.f32.mrf.mxu1 }
 0x132   : > { %v877_v10 = vadd.f32 %v876_v22, %v2908_v13  ;;  %v2126_v22 = vld [vmem:[%s3833_s3 + $0x58] sm:$0xff] }
 0x134   : > { %v913_v17 = vmax.f32 %v877_v10, 0.0 }
 0x135   : > { %v830_v23 = vpop.f32.mrf.mxu0 }
 0x136   : > { %v831_v49 = vadd.f32 %v830_v23, %v2861_v57  ;;  %v2127_v23 = vld [vmem:[%s3833_s3 + $0x60] sm:$0xff] }
 0x139   : > { %v879_v24 = vpop.f32.mrf.mxu1 }
 0x13a   : > { %v880_v3 = vadd.f32 %v879_v24, %v2861_v57 }
 0x13c   : > { %v915_v9 = vmax.f32 %v880_v3, 0.0 }
 0x13d   : > { %v832_v26 = vpop.f32.mrf.mxu0 }
 0x13e   : > { %v833_v42 = vadd.f32 %v832_v26, %v2875_v62  ;;  %v945_v26 = vpop.permute.xlu1 %944 }
 0x140   : > { %v916_v56 = vmax.f32 %v833_v42, 0.0 }
 0x141   : > { %v881_v27 = vpop.f32.mrf.mxu1 }
 0x142   : > { %v882_v60 = vadd.f32 %v881_v27, %v2875_v62  ;;  %v875_v62 = vadd.f32 %v874_v20, %v2881_v0  ;;  %v2125_v20 = vld [vmem:[%s3833_s3 + $0x50] sm:$0xff]  ;;  %v955_v27 = vpop.permute.xlu0 %954 }
 0x144   : > { %v917_v11 = vmax.f32 %v882_v60, 0.0 }
 0x145   : > { %v835_v28 = vpop.f32.mrf.mxu0 }
 0x146   : > { %v836_v37 = vadd.f32 %v835_v28, %v2886_v2  ;;  %v937_v57 = vpack.c.bf16 %v917_v11, %v915_v9 }
 0x148   : > { %v918_v50 = vmax.f32 %v836_v37, 0.0 }
 0x149   : > { %v884_v29 = vpop.f32.mrf.mxu1 }
 0x14a   : > { %v885_v51 = vadd.f32 %v884_v29, %v2886_v2 }
 0x14c   : > { %v919_v4 = vmax.f32 %v885_v51, 0.0  ;;  %v2129_v51 = vld [vmem:[%s3833_s3 + $0x70] sm:$0xff] }
 0x14d   : > { %v837_v5 = vpop.f32.mrf.mxu0 }
 0x14e   : > { %v838_v35 = vadd.f32 %v837_v5, %v2903_v8 }
 0x150   : > { %v920_v43 = vmax.f32 %v838_v35, 0.0  ;;  %v3011_v35 = vpop.permute.xlu0 %969 }
 0x151   : > { %v886_v31 = vpop.f32.mrf.mxu1 }
 0x152   : > { %v887_v47 = vadd.f32 %v886_v31, %v2903_v8  ;;  %v938_v58 = vpack.c.bf16 %v920_v43, %v918_v50  ;;  %v826_v8 = vadd.f32 %v825_v18, %v2881_v0  ;;  %v911_v18 = vmax.f32 %v875_v62, 0.0  ;;  %v2115_v0 = vld [vmem:[%s3833_s3] sm:$0xff]  ;;  %v3001_v31 = vpop.permute.xlu2 %949  ;;  %v2130_v62 = vld [vmem:[%s3833_s3 + $0x78] sm:$0xff] }
 0x154   : > { %v921_v61 = vmax.f32 %v887_v47, 0.0  ;;  %v910_v14 = vmax.f32 %v826_v8, 0.0 }
 0x155   : > { %v840_v32 = vpop.f32.mrf.mxu0 }
 0x156   : > { %v841_v6 = vadd.f32 %v840_v32, %v2849_v53  ;;  %v939_v12 = vpack.c.bf16 %v921_v61, %v919_v4 }
 0x158   : > { %v922_v38 = vmax.f32 %v841_v6, 0.0 }
 0x159   : > { %v889_v33 = vpop.f32.mrf.mxu1 }
 0x15a   : > { %v890_v41 = vadd.f32 %v889_v33, %v2849_v53  ;;  %v828_v53 = vadd.f32 %v827_v21, %v2908_v13  ;;  %v935_v21 = vpack.c.bf16 %v913_v17, %v911_v18  ;;  %v2119_v13 = vld [vmem:[%s3833_s3 + $0x20] sm:$0xff]  ;;  %v3005_v33 = vpop.permute.xlu1 %959 }
 0x15c   : > { %v923_v52 = vmax.f32 %v890_v41, 0.0  ;;  %v912_v2 = vmax.f32 %v828_v53, 0.0 }
 0x15d   : > { %v842_v34 = vpop.f32.mrf.mxu0 }
 0x15e   : > { %v843_v36 = vadd.f32 %v842_v34, %v2866_v59  ;;  %v934_v16 = vpack.c.bf16 %v912_v2, %v910_v14 }
 0x160   : > { %v924_v39 = vmax.f32 %v843_v36, 0.0  ;;  %v2128_v36 = vld [vmem:[%s3833_s3 + $0x68] sm:$0xff] }
 0x161   : > { %v891_v44 = vpop.f32.mrf.mxu1 }
 0x162   : > { %v940_v46 = vpack.c.bf16 %v924_v39, %v922_v38  ;;  %v892_v48 = vadd.f32 %v891_v44, %v2866_v59  ;;  %v914_v59 = vmax.f32 %v831_v49, 0.0  ;;  %v965_v39 = vpop.permute.xlu2 %964  ;;  %v975_v43 = vpop.permute.xlu1 %974 }
 0x164   : > { %1198 = vmatpush.bf16.msrb.mxu0 %v940_v46  ;;  %2132 = vmatpush.bf16.msra.mxu2 %v940_v46  ;;  %v925_v54 = vmax.f32 %v892_v48, 0.0  ;;  %v936_v7 = vpack.c.bf16 %v916_v56, %v914_v59  ;;  %v985_v46 = vpop.permute.xlu0 %984 }
 0x166   : > { %v941_v1 = vpack.c.bf16 %v925_v54, %v923_v52 }
 0x168   : > { %1199 = vmatpush.bf16.msrb.mxu0 %v938_v58  ;;  %2133 = vmatpush.bf16.msra.mxu2 %v938_v58 }
 0x169   : > { %1287 = vmatpush.bf16.msrb.mxu1 %v941_v1  ;;  %2140 = vmatpush.bf16.msra.mxu3 %v941_v1 }
 0x16a   : > { %v3020_v50 = vpop.permute.xlu2 %979  ;;  %v3025_v54 = vpop.permute.xlu1 %989 }
 0x16c   : > { %1200 = vmatpush.bf16.msrb.mxu0 %v936_v7  ;;  %2134 = vmatpush.bf16.msra.mxu2 %v936_v7  ;;  %v3027_v53 = vpop.permute.xlu0 %999 }
 0x16d   : > { %1288 = vmatpush.bf16.msrb.mxu1 %v939_v12  ;;  %2141 = vmatpush.bf16.msra.mxu3 %v939_v12 }
 0x170   : > { %1201 = vmatpush.bf16.msrb.mxu0 %v934_v16  ;;  %2135 = vmatpush.bf16.msra.mxu2 %v934_v16 }
 0x171   : > { %1289 = vmatpush.bf16.msrb.mxu1 %v937_v57  ;;  %2142 = vmatpush.bf16.msra.mxu3 %v937_v57 }
 0x172   : > { %v995_v8 = vpop.permute.xlu2 %994  ;;  %v1005_v59 = vpop.permute.xlu1 %1004 }
 0x174   : > { %1202 = vmatpush.bf16.msrb.mxu0 %v2925_v15  ;;  %2136 = vmatpush.bf16.msra.mxu2 %v2925_v15  ;;  %v2123_v15 = vld [vmem:[%s3833_s3 + $0x40] sm:$0xff] }
 0x175   : > { %1290 = vmatpush.bf16.msrb.mxu1 %v935_v21  ;;  %2143 = vmatpush.bf16.msra.mxu3 %v935_v21 }
 0x178   : > { %1203 = vmatpush.bf16.msrb.mxu0 %v2918_v55  ;;  %2137 = vmatpush.bf16.msra.mxu2 %v2918_v55  ;;  %v2118_v55 = vld [vmem:[%s3833_s3 + $0x18] sm:$0xff] }
 0x179   : > { %1291 = vmatpush.bf16.msrb.mxu1 %v2928_v19  ;;  %2144 = vmatpush.bf16.msra.mxu3 %v2928_v19  ;;  %v2124_v19 = vld [vmem:[%s3833_s3 + $0x48] sm:$0xff] }
 0x17c   : > { %1204 = vmatpush.bf16.msrb.mxu0 %v2914_v40  ;;  %2138 = vmatpush.bf16.msra.mxu2 %v2914_v40  ;;  %v2116_v40 = vld [vmem:[%s3833_s3 + $0x8] sm:$0xff] }
 0x17d   : > { %1292 = vmatpush.bf16.msrb.mxu1 %v2920_v63  ;;  %2145 = vmatpush.bf16.msra.mxu3 %v2920_v63  ;;  %v2122_v63 = vld [vmem:[%s3833_s3 + $0x38] sm:$0xff] }
 0x180   : > { %1205 = vmatpush.bf16.msrb.mxu0 %v2910_v25  ;;  %2139 = vmatpush.bf16.msra.mxu2 %v2910_v25  ;;  %v2120_v25 = vld [vmem:[%s3833_s3 + $0x28] sm:$0xff] }
 0x181   : > { %1293 = vmatpush.bf16.msrb.mxu1 %v2916_v45  ;;  %2146 = vmatpush.bf16.msra.mxu3 %v2916_v45  ;;  %v2117_v45 = vld [vmem:[%s3833_s3 + $0x10] sm:$0xff] }
 0x183   : > { %1206 = vmatmul.bf16.vlgmr.msrb.gmra.mxu0 %v2115_v0  ;;  %1226 = vmatmul.bf16.vlgmr.msra.gmra.mxu2 %v2119_v13 }
 0x185   : > { %1294 = vmatpush.bf16.msrb.mxu1 %v2912_v30  ;;  %2147 = vmatpush.bf16.msra.mxu3 %v2912_v30  ;;  %v2121_v30 = vld [vmem:[%s3833_s3 + $0x30] sm:$0xff] }
 0x188   : > { %1295 = vmatmul.bf16.vlgmr.msrb.gmra.mxu1 %v2115_v0  ;;  %1315 = vmatmul.bf16.vlgmr.msra.gmra.mxu3 %v2119_v13  ;;  %v1010_v0 = vpop.permute.xlu2 %1009 }
 0x193   : > { %1211 = vmatmul.bf16.gmra.mxu0 %v2116_v40  ;;  %1231 = vmatmul.bf16.gmra.mxu2 %v2120_v25 }
 0x198   : > { %1300 = vmatmul.bf16.gmra.mxu1 %v2116_v40  ;;  %1320 = vmatmul.bf16.gmra.mxu3 %v2120_v25 }
 0x1a3   : > { %1216 = vmatmul.bf16.gmra.mxu0 %v2117_v45  ;;  %1236 = vmatmul.bf16.gmra.mxu2 %v2121_v30 }
 0x1a8   : > { %1305 = vmatmul.bf16.gmra.mxu1 %v2117_v45  ;;  %1325 = vmatmul.bf16.gmra.mxu3 %v2121_v30 }
 0x1b3   : > { %1221 = vmatmul.bf16.gmra.mxu0 %v2118_v55  ;;  %1241 = vmatmul.bf16.gmra.mxu2 %v2122_v63 }
 0x1b8   : > { %1310 = vmatmul.bf16.gmra.mxu1 %v2118_v55  ;;  %1330 = vmatmul.bf16.gmra.mxu3 %v2122_v63 }
 0x1c3   : > { %1246 = vmatmul.bf16.gmra.mxu2 %v2123_v15 }
 0x1c8   : > { %1335 = vmatmul.bf16.gmra.mxu3 %v2123_v15 }
 0x1d3   : > { %1251 = vmatmul.bf16.gmra.mxu2 %v2124_v19 }
 0x1d8   : > { %1340 = vmatmul.bf16.gmra.mxu3 %v2124_v19 }
 0x1e3   : > { %1256 = vmatmul.bf16.gmra.mxu2 %v2125_v20 }
 0x1e8   : > { %1345 = vmatmul.bf16.gmra.mxu3 %v2125_v20 }
 0x1f3   : > { %1261 = vmatmul.bf16.gmra.mxu2 %v2126_v22 }
 0x1f8   : > { %1350 = vmatmul.bf16.gmra.mxu3 %v2126_v22 }
 0x200   : > { %v1207_v24 = vpop.f32.mrf.mxu0 }
 0x201   : > { %v3036_v7 = vadd.f32 %v1207_v24, %v945_v26 }
 0x203   : > { %1266 = vmatmul.bf16.gmra.mxu2 %v2127_v23 }
 0x205   : > { %v1296_v28 = vpop.f32.mrf.mxu1 }
 0x206   : > { %v1227_v29 = vpop.f32.mrf.mxu2  ;;  %v3050_v18 = vadd.f32 %v1296_v28, %v945_v26 }
 0x207   : > { %v3054_v13 = vadd.f32 %v1227_v29, %v985_v46 }
 0x208   : > { %1355 = vmatmul.bf16.gmra.mxu3 %v2127_v23  ;;  %v1209_v5 = vpop.f32.mrf.mxu0  ;;  %3892 = vst [vmem:[#allocation14_spill] sm:$0xff] %v3050_v18 }
 0x209   : > { %v3065_v63 = vadd.f32 %v1209_v5, %v3001_v31  ;;  %v1015_v5 = vpop.permute.xlu0 %1014 }
 0x20b   : > { %v3003_v32 = vpop.f32.mrf.mxu3 }
 0x20d   : > { %v3007_v6 = vpop.f32.mrf.mxu1 }
 0x20e   : > { %v3009_v34 = vpop.f32.mrf.mxu2 }
 0x210   : > { %v1212_v37 = vpop.f32.mrf.mxu0 }
 0x211   : > { %v3032_v3 = vadd.f32 %v1212_v37, %v955_v27 }
 0x213   : > { %v3016_v38 = vpop.f32.mrf.mxu3  ;;  %1271 = vmatmul.bf16.gmra.mxu2 %v2128_v36  ;;  %v1376_v14 = vmax.f32 %v3036_v7, %v3032_v3 }
 0x215   : > { %v1301_v41 = vpop.f32.mrf.mxu1 }
 0x216   : > { %v1232_v42 = vpop.f32.mrf.mxu2  ;;  %v3045_v9 = vadd.f32 %v1301_v41, %v955_v27 }
 0x217   : > { %v3067_v15 = vadd.f32 %v1232_v42, %v995_v8 }
 0x218   : > { %1360 = vmatmul.bf16.gmra.mxu3 %v2128_v36  ;;  %v1214_v44 = vpop.f32.mrf.mxu0  ;;  %3891 = vst [vmem:[#allocation13_spill] sm:$0xff] %v3045_v9  ;;  %v1413_v30 = vmax.f32 %v3050_v18, %v3045_v9  ;;  %v3082_v36 = vadd.f32 %v3003_v32, %v985_v46  ;;  %v3097_v32 = vadd.f32 %v3007_v6, %v3001_v31 }
 0x219   : > { %v3057_v40 = vadd.f32 %v1214_v44, %v3005_v33 }
 0x21a   : > { %3897 = vst [vmem:[#allocation19_spill] sm:$0xff] %v3097_v32 }
 0x21b   : > { %v1321_v47 = vpop.f32.mrf.mxu3  ;;  %v1377_v27 = vmax.f32 %v3065_v63, %v3057_v40 }
 0x21c   : > { %v3099_v46 = vadd.f32 %v1321_v47, %v995_v8 }
 0x21d   : > { %v1303_v48 = vpop.f32.mrf.mxu1 }
 0x21e   : > { %v3018_v49 = vpop.f32.mrf.mxu2  ;;  %v3085_v37 = vadd.f32 %v1303_v48, %v3005_v33  ;;  %3898 = vst [vmem:[#allocation20_spill] sm:$0xff] %v3099_v46 }
 0x220   : > { %v1217_v52 = vpop.f32.mrf.mxu0  ;;  %3896 = vst [vmem:[#allocation18_spill] sm:$0xff] %v3085_v37  ;;  %v1414_v31 = vmax.f32 %v3097_v32, %v3085_v37 }
 0x221   : > { %v3038_v10 = vadd.f32 %v1217_v52, %v965_v39  ;;  %v3107_v52 = vadd.f32 %v3009_v34, %v3025_v54 }
 0x223   : > { %v1323_v56 = vpop.f32.mrf.mxu3  ;;  %1276 = vmatmul.bf16.gmra.mxu2 %v2129_v51  ;;  %v1378_v17 = vmax.f32 %v1376_v14, %v3038_v10 }
 0x224   : > { %v3030_v58 = vadd.f32 %v1323_v56, %v3027_v53 }
 0x225   : > { %v1306_v60 = vpop.f32.mrf.mxu1 }
 0x226   : > { %3889 = vst [vmem:[#allocation11_spill] sm:$0xff] %v3030_v58  ;;  %v1237_v61 = vpop.f32.mrf.mxu2  ;;  %v3052_v21 = vadd.f32 %v1306_v60, %v965_v39 }
 0x227   : > { %v3078_v28 = vadd.f32 %v1237_v61, %v1005_v59 }
 0x228   : > { %1365 = vmatmul.bf16.gmra.mxu3 %v2129_v51  ;;  %v1219_v1 = vpop.f32.mrf.mxu0  ;;  %3893 = vst [vmem:[#allocation15_spill] sm:$0xff] %v3052_v21  ;;  %v1415_v23 = vmax.f32 %v1413_v30, %v3052_v21 }
 0x229   : > { %v3070_v19 = vadd.f32 %v1219_v1, %v3011_v35 }
 0x22b   : > { %v1326_v4 = vpop.f32.mrf.mxu3  ;;  %v1379_v42 = vmax.f32 %v1377_v27, %v3070_v19 }
 0x22c   : > { %v3034_v2 = vadd.f32 %v1326_v4, %v1005_v59 }
 0x22d   : > { %v1308_v11 = vpop.f32.mrf.mxu1 }
 0x22e   : > { %3890 = vst [vmem:[#allocation12_spill] sm:$0xff] %v3034_v2  ;;  %v1239_v12 = vpop.f32.mrf.mxu2  ;;  %v3102_v33 = vadd.f32 %v1308_v11, %v3011_v35  ;;  %v3118_v35 = vadd.f32 %v3018_v49, %v3027_v53  ;;  %v3131_v49 = vadd.f32 %v3016_v38, %v3025_v54 }
 0x22f   : > { %v3126_v14 = vadd.f32 %v1239_v12, %v1010_v0 }
 0x230   : > { %v1222_v16 = vpop.f32.mrf.mxu0  ;;  %3899 = vst [vmem:[#allocation21_spill] sm:$0xff] %v3102_v33  ;;  %v1416_v8 = vmax.f32 %v1414_v31, %v3102_v33 }
 0x231   : > { %v3048_v57 = vadd.f32 %v1222_v16, %v975_v43  ;;  %v1020_v16 = vpop.permute.xlu1 %1019  ;;  %3902 = vst [vmem:[#allocation24_spill] sm:$0xff] %v3131_v49 }
 0x233   : > { %v1328_v25 = vpop.f32.mrf.mxu3  ;;  %v1380_v45 = vmax.f32 %v1378_v17, %v3048_v57  ;;  %1281 = vmatmul.bf16.gmra.mxu2 %v2130_v62 }
 0x234   : > { %v3062_v55 = vadd.f32 %v1328_v25, %v1010_v0 }
 0x235   : > { %v1382_v20 = vmax.f32 %v1380_v45, %v3054_v13  ;;  %v1311_v22 = vpop.f32.mrf.mxu1 }
 0x236   : > { %3894 = vst [vmem:[#allocation16_spill] sm:$0xff] %v3062_v55  ;;  %v3074_v24 = vadd.f32 %v1311_v22, %v975_v43  ;;  %v1242_v26 = vpop.f32.mrf.mxu2  ;;  %v1025_v22 = vpop.permute.xlu2 %1024 }
 0x237   : > { %v1384_v29 = vmax.f32 %v1382_v20, %v3067_v15  ;;  %v3089_v43 = vadd.f32 %v1242_v26, %v1015_v5 }
 0x238   : > { %3895 = vst [vmem:[#allocation17_spill] sm:$0xff] %v3074_v24  ;;  %v1417_v39 = vmax.f32 %v1415_v23, %v3074_v24  ;;  %1370 = vmatmul.bf16.gmra.mxu3 %v2130_v62  ;;  %v1224_v41 = vpop.f32.mrf.mxu0 }
 0x239   : > { %v1386_v44 = vmax.f32 %v1384_v29, %v3078_v28  ;;  %v3093_v51 = vadd.f32 %v1224_v41, %v3020_v50  ;;  %v1035_v31 = vpop.permute.xlu1 %1034 }
 0x23a   : > { %v1419_v48 = vmax.f32 %v1417_v39, %v3082_v36  ;;  %v1030_v39 = vpop.permute.xlu0 %1029 }
 0x23b   : > { %v1388_v56 = vmax.f32 %v1386_v44, %v3089_v43  ;;  %v1331_v60 = vpop.f32.mrf.mxu3  ;;  %v1381_v61 = vmax.f32 %v1379_v42, %v3093_v51 }
 0x23c   : > { %v3113_v6 = vadd.f32 %v1331_v60, %v1015_v5  ;;  %v1421_v47 = vmax.f32 %v1419_v48, %v3099_v46 }
 0x23d   : > { %v1383_v1 = vmax.f32 %v1381_v61, %v3107_v52  ;;  %v1313_v34 = vpop.f32.mrf.mxu1 }
 0x23e   : > { %3900 = vst [vmem:[#allocation22_spill] sm:$0xff] %v3113_v6  ;;  %v1423_v59 = vmax.f32 %v1421_v47, %v3034_v2  ;;  %v3124_v4 = vadd.f32 %v1313_v34, %v3020_v50  ;;  %v1244_v11 = vpop.f32.mrf.mxu2 }
 0x23f   : > { %v1385_v62 = vmax.f32 %v1383_v1, %v3118_v35  ;;  %v3135_v25 = vadd.f32 %v1244_v11, %v1020_v16  ;;  %v1040_v11 = vpop.permute.xlu2 %1039 }
 0x240   : > { %3901 = vst [vmem:[#allocation23_spill] sm:$0xff] %v3124_v4  ;;  %v1425_v53 = vmax.f32 %v1423_v59, %v3113_v6  ;;  %v1418_v17 = vmax.f32 %v1416_v8, %v3124_v4 }
 0x241   : > { %v1387_v45 = vmax.f32 %v1385_v62, %v3126_v14 }
 0x242   : > { %v1420_v50 = vmax.f32 %v1418_v17, %v3131_v49 }
 0x243   : > { %v1389_v12 = vmax.f32 %v1387_v45, %v3135_v25  ;;  %v1333_v0 = vpop.f32.mrf.mxu3 }
 0x244   : > { %v3140_v30 = vadd.f32 %v1333_v0, %v1020_v16  ;;  %v1422_v20 = vmax.f32 %v1420_v50, %v3030_v58 }
 0x246   : > { %3903 = vst [vmem:[#allocation25_spill] sm:$0xff] %v3140_v30  ;;  %v1424_v38 = vmax.f32 %v1422_v20, %v3062_v55  ;;  %v1247_v54 = vpop.f32.mrf.mxu2 }
 0x247   : > { %v3144_v23 = vadd.f32 %v1247_v54, %v1025_v22 }
 0x248   : > { %v1426_v26 = vmax.f32 %v1424_v38, %v3140_v30 }
 0x249   : > { %v1390_v27 = vmax.f32 %v1388_v56, %v3144_v23 }
 0x24b   : > { %v1336_v29 = vpop.f32.mrf.mxu3 }
 0x24c   : > { %v3148_v5 = vadd.f32 %v1336_v29, %v1025_v22 }
 0x24e   : > { %3904 = vst [vmem:[#allocation26_spill] sm:$0xff] %v3148_v5  ;;  %v1427_v41 = vmax.f32 %v1425_v53, %v3148_v5  ;;  %v1249_v42 = vpop.f32.mrf.mxu2 }
 0x24f   : > { %v3151_v44 = vadd.f32 %v1249_v42, %v1030_v39 }
 0x251   : > { %v1391_v48 = vmax.f32 %v1389_v12, %v3151_v44  ;;  %v1045_v12 = vpop.permute.xlu0 %1044 }
 0x253   : > { %v1338_v60 = vpop.f32.mrf.mxu3 }
 0x254   : > { %v3154_v61 = vadd.f32 %v1338_v60, %v1030_v39 }
 0x256   : > { %3905 = vst [vmem:[#allocation27_spill] sm:$0xff] %v3154_v61  ;;  %v3157_v47 = vmax.f32 %v1426_v26, %v3154_v61  ;;  %v1252_v1 = vpop.f32.mrf.mxu2 }
 0x257   : > { %v3159_v56 = vadd.f32 %v1252_v1, %v1035_v31 }
 0x259   : > { %v1392_v34 = vmax.f32 %v1390_v27, %v3159_v56 }
 0x25b   : > { %v1341_v8 = vpop.f32.mrf.mxu3 }
 0x25c   : > { %v3162_v59 = vadd.f32 %v1341_v8, %v1035_v31 }
 0x25e   : > { %3906 = vst [vmem:[#allocation28_spill] sm:$0xff] %v3162_v59  ;;  %v1429_v62 = vmax.f32 %v1427_v41, %v3162_v59  ;;  %v1254_v16 = vpop.f32.mrf.mxu2 }
 0x25f   : > { %v3165_v53 = vadd.f32 %v1254_v16, %v1040_v11 }
 0x261   : > { %v1393_v17 = vmax.f32 %v1391_v48, %v3165_v53 }
 0x263   : > { %v1343_v45 = vpop.f32.mrf.mxu3 }
 0x264   : > { %v3168_v50 = vadd.f32 %v1343_v45, %v1040_v11  ;;  %v1050_v45 = vpop.permute.xlu1 %1049 }
 0x266   : > { %3907 = vst [vmem:[#allocation29_spill] sm:$0xff] %v3168_v50  ;;  %v1430_v0 = vmax.f32 %v3157_v47, %v3168_v50  ;;  %v1257_v20 = vpop.f32.mrf.mxu2 }
 0x267   : > { %v3172_v22 = vadd.f32 %v1257_v20, %v1045_v12  ;;  %v1055_v20 = vpop.permute.xlu2 %1054 }
 0x269   : > { %v1394_v38 = vmax.f32 %v1392_v34, %v3172_v22 }
 0x26b   : > { %v1346_v54 = vpop.f32.mrf.mxu3 }
 0x26c   : > { %v3175_v26 = vadd.f32 %v1346_v54, %v1045_v12  ;;  %v1060_v54 = vpop.permute.xlu0 %1059 }
 0x26e   : > { %3908 = vst [vmem:[#allocation30_spill] sm:$0xff] %v3175_v26  ;;  %v3178_v27 = vmax.f32 %v1429_v62, %v3175_v26  ;;  %v1259_v29 = vpop.f32.mrf.mxu2  ;;  %v1065_v62 = vpop.permute.xlu1 %1064 }
 0x26f   : > { %v1070_v24 = vpop.permute.xlu2 %1069  ;;  %v3180_v32 = vadd.f32 %v1259_v29, %v1050_v45 }
 0x271   : > { %v1395_v5 = vmax.f32 %v1393_v17, %v3180_v32 }
 0x273   : > { %v1348_v39 = vpop.f32.mrf.mxu3 }
 0x274   : > { %v1075_v37 = vpop.permute.xlu0 %1074  ;;  %v3191_v55 = vadd.f32 %v1348_v39, %v1050_v45 }
 0x276   : > { %v1262_v41 = vpop.f32.mrf.mxu2  ;;  %v1080_v9 = vpop.permute.xlu1 %1079 }
 0x277   : > { %v1085_v26 = vpop.permute.xlu2 %1084  ;;  %v3182_v50 = vadd.f32 %v1262_v41, %v1055_v20 }
 0x279   : > { %v1396_v2 = vmax.f32 %v1394_v38, %v3182_v50 }
 0x27b   : > { %v1351_v42 = vpop.f32.mrf.mxu3 }
 0x27c   : > { %v1090_v41 = vpop.permute.xlu0 %1089 }
 0x27e   : > { %v1264_v48 = vpop.f32.mrf.mxu2  ;;  %v1095_v45 = vpop.permute.xlu1 %1094 }
 0x27f   : > { %v3184_v59 = vadd.f32 %v1264_v48, %v1060_v54  ;;  %v3199_v48 = vadd.f32 %v1351_v42, %v1055_v20 }
 0x281   : > { %v1397_v29 = vmax.f32 %v1395_v5, %v3184_v59  ;;  %v1432_v5 = vmax.f32 %v1430_v0, %v3191_v55 }
 0x283   : > { %v1353_v60 = vpop.f32.mrf.mxu3 }
 0x284   : > { %v3201_v49 = vadd.f32 %v1353_v60, %v1060_v54 }
 0x286   : > { %v1267_v31 = vpop.f32.mrf.mxu2 }
 0x287   : > { %v3187_v30 = vadd.f32 %v1267_v31, %v1065_v62 }
 0x289   : > { %v1398_v17 = vmax.f32 %v1396_v2, %v3187_v30  ;;  %v1100_v2 = vpop.permute.xlu2 %1099 }
 0x28b   : > { %v1356_v1 = vpop.f32.mrf.mxu3 }
 0x28e   : > { %v1269_v47 = vpop.f32.mrf.mxu2 }
 0x28f   : > { %v3189_v6 = vadd.f32 %v1269_v47, %v1070_v24 }
 0x291   : > { %v1399_v31 = vmax.f32 %v1397_v29, %v3189_v6 }
 0x293   : > { %v1358_v8 = vpop.f32.mrf.mxu3 }
 0x296   : > { %v1272_v11 = vpop.f32.mrf.mxu2 }
 0x297   : > { %v3195_v58 = vadd.f32 %v1272_v11, %v1075_v37  ;;  %v3210_v11 = vadd.f32 %v1356_v1, %v1065_v62 }
 0x299   : > { %v1400_v42 = vmax.f32 %v1398_v17, %v3195_v58 }
 0x29b   : > { %v1361_v16 = vpop.f32.mrf.mxu3 }
 0x29c   : > { %v3221_v54 = vadd.f32 %v1361_v16, %v1075_v37 }
 0x29e   : > { %v1274_v34 = vpop.f32.mrf.mxu2 }
 0x29f   : > { %v3197_v46 = vadd.f32 %v1274_v34, %v1080_v9  ;;  %v3212_v34 = vadd.f32 %v1358_v8, %v1070_v24 }
 0x2a1   : > { %v1401_v60 = vmax.f32 %v1399_v31, %v3197_v46 }
 0x2a3   : > { %v1363_v12 = vpop.f32.mrf.mxu3 }
 0x2a4   : > { %v3223_v29 = vadd.f32 %v1363_v12, %v1080_v9 }
 0x2a6   : > { %v1277_v4 = vpop.f32.mrf.mxu2 }
 0x2a7   : > { %v3205_v47 = vadd.f32 %v1277_v4, %v1085_v26  ;;  %v1433_v4 = vmax.f32 %v3178_v27, %v3199_v48 }
 0x2a9   : > { %v1402_v24 = vmax.f32 %v1400_v42, %v3205_v47 }
 0x2ab   : > { %v1366_v33 = vpop.f32.mrf.mxu3 }
 0x2ac   : > { %v3231_v17 = vadd.f32 %v1366_v33, %v1085_v26 }
 0x2ae   : > { %v1279_v21 = vpop.f32.mrf.mxu2 }
 0x2af   : > { %v3207_v39 = vadd.f32 %v1279_v21, %v1090_v41  ;;  %v1434_v21 = vmax.f32 %v1432_v5, %v3201_v49 }
 0x2b1   : > { %v1403_v1 = vmax.f32 %v1401_v60, %v3207_v39  ;;  %v1436_v62 = vmax.f32 %v1434_v21, %v3212_v34 }
 0x2b3   : > { %v1368_v18 = vpop.f32.mrf.mxu3  ;;  %v1438_v12 = vmax.f32 %v1436_v62, %v3223_v29 }
 0x2b4   : > { %v3233_v27 = vadd.f32 %v1368_v18, %v1090_v41 }
 0x2b6   : > { %v1282_v61 = vpop.f32.mrf.mxu2 }
 0x2b7   : > { %v3216_v20 = vadd.f32 %v1282_v61, %v1095_v45  ;;  %v1435_v61 = vmax.f32 %v1433_v4, %v3210_v11  ;;  %v1440_v4 = vmax.f32 %v1438_v12, %v3233_v27 }
 0x2b9   : > { %v1404_v37 = vmax.f32 %v1402_v24, %v3216_v20  ;;  %v1437_v16 = vmax.f32 %v1435_v61, %v3221_v54 }
 0x2bb   : > { %v1371_v38 = vpop.f32.mrf.mxu3  ;;  %v1439_v60 = vmax.f32 %v1437_v16, %v3231_v17 }
 0x2bc   : > { %v3239_v31 = vadd.f32 %v1371_v38, %v1095_v45 }
 0x2be   : > { %v1284_v0 = vpop.f32.mrf.mxu2  ;;  %v1441_v26 = vmax.f32 %v1439_v60, %v3239_v31 }
 0x2bf   : > { %v3227_v8 = vadd.f32 %v1284_v0, %v1100_v2 }
 0x2c1   : > { %v1405_v9 = vmax.f32 %v1403_v1, %v3227_v8 }
 0x2c3   : > { %v1406_v5 = vmax.f32 %v1404_v37, %v1405_v9  ;;  %v1373_v42 = vpop.f32.mrf.mxu3 }
 0x2c4   : > { %v3243_v33 = vadd.f32 %v1373_v42, %v1100_v2 }
 0x2c5   : > { %v1407_v18 = vrot.slane %v1406_v5, 4 }
 0x2c6   : > { %v1442_v41 = vmax.f32 %v1440_v4, %v3243_v33 }
 0x2c7   : > { %v1408_v21 = vmax.f32 %v1406_v5, %v1407_v18 }
 0x2c8   : > { %v1443_v0 = vmax.f32 %v1441_v26, %v1442_v41  ;;  %v3915_v41 = vld [vmem:[#allocation16_spill] sm:$0xff] }
 0x2c9   : > { %v1409_v24 = vrot.slane %v1408_v21, 2 }
 0x2ca   : > { %v1444_v2 = vrot.slane %v1443_v0, 4 }
 0x2cb   : > { %v1410_v1 = vmax.f32 %v1408_v21, %v1409_v24 }
 0x2cc   : > { %v1445_v21 = vmax.f32 %v1443_v0, %v1444_v2 }
 0x2cd   : > { %v1411_v61 = vrot.slane %v1410_v1, 1 }
 0x2ce   : > { %v1446_v24 = vrot.slane %v1445_v21, 2 }
 0x2cf   : > { %v3247_v38 = vmax.f32 %v1410_v1, %v1411_v61 }
 0x2d0   : > { %v1447_v61 = vmax.f32 %v1445_v21, %v1446_v24 }
 0x2d1   : > { %v1450_v45 = vsub.f32 %v3036_v7, %v3247_v38  ;;  %v1452_v62 = vsub.f32 %v3065_v63, %v3247_v38  ;;  %v1466_v37 = vsub.f32 %v3054_v13, %v3247_v38  ;;  %v1468_v9 = vsub.f32 %v3107_v52, %v3247_v38  ;;  %v3921_v52 = vld [vmem:[#allocation28_spill] sm:$0xff]  ;;  %v3922_v13 = vld [vmem:[#allocation29_spill] sm:$0xff] }
 0x2d2   : > { %v1470_v16 = vsub.f32 %v3067_v15, %v3247_v38  ;;  %v1472_v12 = vsub.f32 %v3118_v35, %v3247_v38  ;;  %v1474_v5 = vsub.f32 %v3078_v28, %v3247_v38  ;;  %v1476_v7 = vsub.f32 %v3126_v14, %v3247_v38  ;;  %v3920_v28 = vld [vmem:[#allocation27_spill] sm:$0xff]  ;;  %v3924_v15 = vld [vmem:[#allocation30_spill] sm:$0xff] }
 0x2d3   : > { %v1454_v60 = vsub.f32 %v3032_v3, %v3247_v38  ;;  %v1456_v18 = vsub.f32 %v3057_v40, %v3247_v38  ;;  %v1514_v40 = vmul.f32 1.442695, %v1450_v45  ;;  %v1518_v4 = vmul.f32 1.442695, %v1452_v62  ;;  %v3928_v14 = vld [vmem:[#allocation14_spill] sm:$0xff] }
 0x2d4   : > { %v1458_v26 = vsub.f32 %v3038_v10, %v3247_v38  ;;  %v1460_v0 = vsub.f32 %v3070_v19, %v3247_v38  ;;  %v1462_v1 = vsub.f32 %v3048_v57, %v3247_v38  ;;  %v1464_v45 = vsub.f32 %v3093_v51, %v3247_v38 }
 0x2d5   : > { %v1522_v42 = vmul.f32 1.442695, %v1454_v60  ;;  %2224 = vpow2.f32 %v1514_v40  ;;  %v1526_v2 = vmul.f32 1.442695, %v1456_v18  ;;  %v1546_v21 = vmul.f32 1.442695, %v1466_v37 }
 0x2d6   : > { %2226 = vpow2.f32 %v1518_v4  ;;  %v1530_v3 = vmul.f32 1.442695, %v1458_v26  ;;  %v1534_v62 = vmul.f32 1.442695, %v1460_v0  ;;  %v1538_v19 = vmul.f32 1.442695, %v1462_v1 }
 0x2d7   : > { %2228 = vpow2.f32 %v1522_v42  ;;  %v1542_v57 = vmul.f32 1.442695, %v1464_v45  ;;  %v1448_v42 = vrot.slane %v1447_v61, 1  ;;  %v1550_v1 = vmul.f32 1.442695, %v1468_v9  ;;  %v3912_v9 = vld [vmem:[#allocation20_spill] sm:$0xff] }
 0x2d8   : > { %2230 = vpow2.f32 %v1526_v2  ;;  %v1554_v45 = vmul.f32 1.442695, %v1470_v16  ;;  %v3914_v16 = vld [vmem:[#allocation12_spill] sm:$0xff]  ;;  %v3927_v37 = vsub.f32 %v3135_v25, %v3247_v38 }
 0x2d9   : > { %2232 = vpow2.f32 %v1530_v3  ;;  %v3315_v40 = vmax.f32 %v1447_v61, %v1448_v42 }
 0x2da   : > { %2234 = vpow2.f32 %v1534_v62  ;;  %v1558_v62 = vmul.f32 1.442695, %v1472_v12  ;;  %v3919_v12 = vld [vmem:[#allocation26_spill] sm:$0xff] }
 0x2db   : > { %v3303_v10 = vpop.eup %2224  ;;  %2236 = vpow2.f32 %v1538_v19  ;;  %v3910_v19 = vld [vmem:[#allocation24_spill] sm:$0xff] }
 0x2dc   : > { %v3305_v60 = vpop.eup %2226  ;;  %2238 = vpow2.f32 %v1542_v57 }
 0x2dd   : > { %v1642_v4 = vadd.f32 %v3305_v60, %v3303_v10  ;;  %v3309_v18 = vpop.eup %2228  ;;  %2240 = vpow2.f32 %v1546_v21  ;;  %v1562_v21 = vmul.f32 1.442695, %v1474_v5 }
 0x2de   : > { %v3312_v51 = vpop.eup %2230  ;;  %2242 = vpow2.f32 %v1550_v1  ;;  %v3916_v1 = vld [vmem:[#allocation22_spill] sm:$0xff] }
 0x2df   : > { %v1643_v26 = vadd.f32 %v3309_v18, %v1642_v4  ;;  %v3317_v3 = vpop.eup %2232  ;;  %2244 = vpow2.f32 %v1554_v45  ;;  %v1566_v45 = vmul.f32 1.442695, %v1476_v7  ;;  %v1451_v7 = vsub.f32 %v3928_v14, %v3315_v40 }
 0x2e0   : > { %v3320_v2 = vpop.eup %2234  ;;  %2246 = vpow2.f32 %v1558_v62  ;;  %v1574_v62 = vmul.f32 1.442695, %v3927_v37  ;;  %v3931_v37 = vsub.f32 %v3144_v23, %v3247_v38  ;;  %v3934_v23 = vld [vmem:[#allocation18_spill] sm:$0xff] }
 0x2e1   : > { %v1644_v24 = vadd.f32 %v3312_v51, %v1643_v26  ;;  %3909 = vst [vmem:[#allocation31_spill] sm:$0xff] %v3320_v2  ;;  %v3327_v42 = vpop.eup %2236  ;;  %v3913_v26 = vld [vmem:[#allocation11_spill] sm:$0xff]  ;;  %2248 = vpow2.f32 %v1562_v21 }
 0x2e2   : > { %3911 = vst [vmem:[#allocation24_spill] sm:$0xff] %v3327_v42  ;;  %v3343_v35 = vpop.eup %2238  ;;  %2250 = vpow2.f32 %v1566_v45  ;;  %v3930_v21 = vld [vmem:[#allocation19_spill] sm:$0xff]  ;;  %v3932_v45 = vsub.f32 %v3151_v44, %v3247_v38 }
 0x2e3   : > { %v1645_v0 = vadd.f32 %v3317_v3, %v1644_v24  ;;  %3917 = vst [vmem:[#allocation20_spill] sm:$0xff] %v3343_v35  ;;  %v3918_v24 = vld [vmem:[#allocation25_spill] sm:$0xff]  ;;  %v3356_v63 = vpop.eup %2240 }
 0x2e4   : > { %3923 = vst [vmem:[#allocation11_spill] sm:$0xff] %v3356_v63  ;;  %v1582_v57 = vmul.f32 1.442695, %v3932_v45 }
 0x2e5   : > { %v1646_v4 = vadd.f32 %v3320_v2, %v1645_v0  ;;  %v1516_v2 = vmul.f32 1.442695, %v1451_v7 }
 0x2e7   : > { %v1647_v0 = vadd.f32 %v3327_v42, %v1646_v4  ;;  %v3364_v42 = vpop.eup %2242 }
 0x2e8   : > { %3925 = vst [vmem:[#allocation12_spill] sm:$0xff] %v3364_v42 }
 0x2e9   : > { %v1648_v4 = vadd.f32 %v3343_v35, %v1647_v0  ;;  %v3926_v0 = vsub.f32 %v3089_v43, %v3247_v38 }
 0x2eb   : > { %v1649_v5 = vadd.f32 %v3356_v63, %v1648_v4  ;;  %v1570_v61 = vmul.f32 1.442695, %v3926_v0  ;;  %v3377_v4 = vpop.eup %2244  ;;  %v1453_v63 = vsub.f32 %v3930_v21, %v3315_v40  ;;  %v3933_v21 = vld [vmem:[#allocation13_spill] sm:$0xff] }
 0x2ec   : > { %3929 = vst [vmem:[#allocation16_spill] sm:$0xff] %v3377_v4  ;;  %v3389_v14 = vpop.eup %2246 }
 0x2ed   : > { %v1650_v35 = vadd.f32 %v3364_v42, %v1649_v5  ;;  %v1578_v5 = vmul.f32 1.442695, %v3931_v37  ;;  %2252 = vpow2.f32 %v1570_v61  ;;  %v1455_v42 = vsub.f32 %v3933_v21, %v3315_v40  ;;  %v3397_v25 = vpop.eup %2248 }
 0x2ee   : > { %2254 = vpow2.f32 %v1574_v62  ;;  %v1457_v37 = vsub.f32 %v3934_v23, %v3315_v40  ;;  %v3935_v61 = vsub.f32 %v3159_v56, %v3247_v38  ;;  %v3405_v45 = vpop.eup %2250  ;;  %v1492_v62 = vsub.f32 %v3180_v32, %v3247_v38 }
 0x2ef   : > { %v1651_v0 = vadd.f32 %v3377_v4, %v1650_v35  ;;  %v1520_v35 = vmul.f32 1.442695, %v1453_v63  ;;  %2256 = vpow2.f32 %v1578_v5  ;;  %3936 = vst [vmem:[#allocation22_spill] sm:$0xff] %v3405_v45  ;;  %v1524_v21 = vmul.f32 1.442695, %v1455_v42 }
 0x2f0   : > { %v1586_v4 = vmul.f32 1.442695, %v3935_v61  ;;  %2258 = vpow2.f32 %v1582_v57  ;;  %v3938_v63 = vsub.f32 %v3165_v53, %v3247_v38  ;;  %v1528_v57 = vmul.f32 1.442695, %v1457_v37 }
 0x2f1   : > { %v1652_v43 = vadd.f32 %v3389_v14, %v1651_v0  ;;  %v3937_v0 = vld [vmem:[#allocation15_spill] sm:$0xff]  ;;  %2260 = vpow2.f32 %v1516_v2  ;;  %v1494_v42 = vsub.f32 %v3182_v50, %v3247_v38  ;;  %v3941_v32 = vsub.f32 %v3172_v22, %v3247_v38  ;;  %v3942_v2 = vld [vmem:[#allocation17_spill] sm:$0xff] }
 0x2f2   : > { %v1459_v7 = vsub.f32 %v3937_v0, %v3315_v40  ;;  %v1590_v5 = vmul.f32 1.442695, %v3938_v63  ;;  %2262 = vpow2.f32 %v1520_v35  ;;  %v1496_v37 = vsub.f32 %v3184_v59, %v3247_v38  ;;  %v3943_v35 = vld [vmem:[#allocation23_spill] sm:$0xff] }
 0x2f3   : > { %v1653_v44 = vadd.f32 %v3397_v25, %v1652_v43  ;;  %v3415_v56 = vpop.eup %2252  ;;  %v3940_v43 = vld [vmem:[#allocation21_spill] sm:$0xff]  ;;  %2264 = vpow2.f32 %v1586_v4  ;;  %v1594_v0 = vmul.f32 1.442695, %v3941_v32  ;;  %v1598_v50 = vmul.f32 1.442695, %v1492_v62 }
 0x2f4   : > { %3939 = vst [vmem:[#allocation25_spill] sm:$0xff] %v3415_v56  ;;  %v1461_v61 = vsub.f32 %v3940_v43, %v3315_v40  ;;  %v3425_v63 = vpop.eup %2254  ;;  %2266 = vpow2.f32 %v1524_v21  ;;  %v1602_v21 = vmul.f32 1.442695, %v1494_v42  ;;  %v1500_v62 = vsub.f32 %v3189_v6, %v3247_v38 }
 0x2f5   : > { %v1654_v23 = vadd.f32 %v3405_v45, %v1653_v44  ;;  %v1463_v44 = vsub.f32 %v3942_v2, %v3315_v40  ;;  %v1532_v45 = vmul.f32 1.442695, %v1459_v7  ;;  %v3429_v43 = vpop.eup %2256  ;;  %2268 = vpow2.f32 %v1590_v5 }
 0x2f6   : > { %v3434_v22 = vpop.eup %2258  ;;  %2270 = vpow2.f32 %v1528_v57  ;;  %v1536_v32 = vmul.f32 1.442695, %v1461_v61  ;;  %v1498_v7 = vsub.f32 %v3187_v30, %v3247_v38  ;;  %v1606_v61 = vmul.f32 1.442695, %v1496_v37 }
 0x2f7   : > { %v1655_v53 = vadd.f32 %v3415_v56, %v1654_v23  ;;  %v1465_v23 = vsub.f32 %v3943_v35, %v3315_v40  ;;  %v3438_v56 = vpop.eup %2260  ;;  %2272 = vpow2.f32 %v1594_v0  ;;  %v3944_v37 = vsub.f32 %v3082_v36, %v3315_v40 }
 0x2f8   : > { %v3443_v5 = vpop.eup %2262  ;;  %2274 = vpow2.f32 %v1532_v45  ;;  %v1610_v35 = vmul.f32 1.442695, %v1498_v7  ;;  %v3946_v36 = vsub.f32 %v3195_v58, %v3247_v38 }
 0x2f9   : > { %v1656_v4 = vadd.f32 %v3425_v63, %v1655_v53  ;;  %v1540_v53 = vmul.f32 1.442695, %v1463_v44  ;;  %v3447_v2 = vpop.eup %2264  ;;  %2276 = vpow2.f32 %v1598_v50  ;;  %v1679_v30 = vadd.f32 %v3443_v5, %v3438_v56 }
 0x2fa   : > { %v3452_v0 = vpop.eup %2266  ;;  %2278 = vpow2.f32 %v1536_v32  ;;  %v1544_v42 = vmul.f32 1.442695, %v1465_v23  ;;  %v1548_v50 = vmul.f32 1.442695, %v3944_v37  ;;  %v1614_v32 = vmul.f32 1.442695, %v1500_v62 }
 0x2fb   : > { %v1657_v59 = vadd.f32 %v3429_v43, %v1656_v4  ;;  %v3454_v4 = vpop.eup %2268  ;;  %2280 = vpow2.f32 %v1602_v21  ;;  %v1680_v45 = vadd.f32 %v3452_v0, %v1679_v30  ;;  %v1618_v37 = vmul.f32 1.442695, %v3946_v36 }
 0x2fc   : > { %v3458_v44 = vpop.eup %2270  ;;  %2282 = vpow2.f32 %v1540_v53 }
 0x2fd   : > { %v1658_v57 = vadd.f32 %v3434_v22, %v1657_v59  ;;  %v3463_v59 = vpop.eup %2272  ;;  %2284 = vpow2.f32 %v1606_v61  ;;  %v1681_v21 = vadd.f32 %v3458_v44, %v1680_v45 }
 0x2fe   : > { %v3467_v7 = vpop.eup %2274  ;;  %2286 = vpow2.f32 %v1544_v42  ;;  %v3947_v42 = vsub.f32 %v3912_v9, %v3315_v40 }
 0x2ff   : > { %v1659_v6 = vadd.f32 %v3447_v2, %v1658_v57  ;;  %v3945_v57 = vsub.f32 %v3910_v19, %v3315_v40  ;;  %v3472_v53 = vpop.eup %2276  ;;  %2288 = vpow2.f32 %v1610_v35  ;;  %v1682_v61 = vadd.f32 %v3467_v7, %v1681_v21 }
 0x300   : > { %2290 = vpow2.f32 %v1548_v50  ;;  %v1556_v45 = vmul.f32 1.442695, %v3947_v42  ;;  %v3948_v35 = vsub.f32 %v3197_v46, %v3247_v38  ;;  %v3949_v50 = vsub.f32 %v3913_v26, %v3315_v40 }
 0x301   : > { %v1660_v23 = vadd.f32 %v3454_v4, %v1659_v6  ;;  %v1552_v30 = vmul.f32 1.442695, %v3945_v57  ;;  %v3479_v6 = vpop.eup %2278  ;;  %2292 = vpow2.f32 %v1614_v32  ;;  %v3950_v32 = vsub.f32 %v3205_v47, %v3247_v38 }
 0x302   : > { %v3484_v19 = vpop.eup %2280  ;;  %v1622_v57 = vmul.f32 1.442695, %v3948_v35  ;;  %v1560_v21 = vmul.f32 1.442695, %v3949_v50 }
 0x303   : > { %v1661_v62 = vadd.f32 %v3463_v59, %v1660_v23  ;;  %v1683_v23 = vadd.f32 %v3479_v6, %v1682_v61  ;;  %v3491_v36 = vpop.eup %2282  ;;  %2294 = vpow2.f32 %v1552_v30  ;;  %v1626_v42 = vmul.f32 1.442695, %v3950_v32 }
 0x304   : > { %v3496_v9 = vpop.eup %2284  ;;  %2296 = vpow2.f32 %v1618_v37  ;;  %v3951_v30 = vsub.f32 %v3914_v16, %v3315_v40  ;;  %v3952_v37 = vsub.f32 %v3207_v39, %v3247_v38 }
 0x305   : > { %v1662_v58 = vadd.f32 %v3472_v53, %v1661_v62  ;;  %v1684_v62 = vadd.f32 %v3491_v36, %v1683_v23  ;;  %v3503_v35 = vpop.eup %2286  ;;  %2298 = vpow2.f32 %v1556_v45  ;;  %v3953_v45 = vsub.f32 %v3915_v41, %v3315_v40 }
 0x306   : > { %v1564_v61 = vmul.f32 1.442695, %v3951_v30  ;;  %v3508_v26 = vpop.eup %2288  ;;  %2300 = vpow2.f32 %v1622_v57  ;;  %v1630_v50 = vmul.f32 1.442695, %v3952_v37  ;;  %v3954_v57 = vsub.f32 %v3216_v20, %v3247_v38 }
 0x307   : > { %v1663_v46 = vadd.f32 %v3484_v19, %v1662_v58  ;;  %v1685_v58 = vadd.f32 %v3503_v35, %v1684_v62  ;;  %v3515_v32 = vpop.eup %2290  ;;  %2302 = vpow2.f32 %v1560_v21  ;;  %v1568_v23 = vmul.f32 1.442695, %v3953_v45 }
 0x308   : > { %v3520_v16 = vpop.eup %2292  ;;  %2304 = vpow2.f32 %v1626_v42  ;;  %v1634_v30 = vmul.f32 1.442695, %v3954_v57  ;;  %v3955_v21 = vsub.f32 %v3916_v1, %v3315_v40  ;;  %v3956_v42 = vsub.f32 %v3227_v8, %v3247_v38 }
 0x309   : > { %v1664_v47 = vadd.f32 %v3496_v9, %v1663_v46  ;;  %v1686_v46 = vadd.f32 %v3515_v32, %v1685_v58  ;;  %v3527_v37 = vpop.eup %2294  ;;  %2306 = vpow2.f32 %v1564_v61  ;;  %v3957_v61 = vsub.f32 %v3918_v24, %v3315_v40 }
 0x30a   : > { %v1572_v62 = vmul.f32 1.442695, %v3955_v21  ;;  %v3532_v41 = vpop.eup %2296  ;;  %2308 = vpow2.f32 %v1630_v50  ;;  %v1638_v45 = vmul.f32 1.442695, %v3956_v42  ;;  %v3958_v38 = vsub.f32 %v3919_v12, %v3315_v40 }
 0x30b   : > { %v1665_v39 = vadd.f32 %v3508_v26, %v1664_v47  ;;  %v1687_v47 = vadd.f32 %v3527_v37, %v1686_v46  ;;  %v3539_v57 = vpop.eup %2298  ;;  %2310 = vpow2.f32 %v1568_v23  ;;  %v1576_v58 = vmul.f32 1.442695, %v3957_v61 }
 0x30c   : > { %v3544_v1 = vpop.eup %2300  ;;  %2312 = vpow2.f32 %v1634_v30  ;;  %v3960_v30 = vsub.f32 %v3920_v28, %v3315_v40 }
 0x30d   : > { %v1666_v20 = vadd.f32 %v3520_v16, %v1665_v39  ;;  %v1688_v21 = vadd.f32 %v3539_v57, %v1687_v47  ;;  %v3548_v8 = vpop.eup %2302  ;;  %2314 = vpow2.f32 %v1572_v62  ;;  %v1580_v39 = vmul.f32 1.442695, %v3958_v38 }
 0x30e   : > { %v3553_v46 = vpop.eup %2304  ;;  %2316 = vpow2.f32 %v1638_v45  ;;  %v3962_v45 = vsub.f32 %v3921_v52, %v3315_v40 }
 0x30f   : > { %v1667_v50 = vadd.f32 %v3532_v41, %v1666_v20  ;;  %v1689_v23 = vadd.f32 %v3548_v8, %v1688_v21  ;;  %v3557_v42 = vpop.eup %2306  ;;  %2318 = vpow2.f32 %v1576_v58  ;;  %v1584_v20 = vmul.f32 1.442695, %v3960_v30 }
 0x310   : > { %3959 = vst [vmem:[#allocation26_spill] sm:$0xff] %v3557_v42  ;;  %v3562_v47 = vpop.eup %2308  ;;  %2320 = vpow2.f32 %v1580_v39 }
 0x311   : > { %v1668_v24 = vadd.f32 %v3544_v1, %v1667_v50  ;;  %v1690_v12 = vadd.f32 %v3557_v42, %v1689_v23  ;;  %v3566_v61 = vpop.eup %2310  ;;  %v1588_v50 = vmul.f32 1.442695, %v3962_v45  ;;  %2322 = vpow2.f32 %v1584_v20 }
 0x312   : > { %3961 = vst [vmem:[#allocation27_spill] sm:$0xff] %v3566_v61  ;;  %v3571_v21 = vpop.eup %2312  ;;  %v3964_v23 = vsub.f32 %v3922_v13, %v3315_v40  ;;  %v1495_v20 = vsub.f32 %v3199_v48, %v3315_v40 }
 0x313   : > { %v1669_v62 = vadd.f32 %v3553_v46, %v1668_v24  ;;  %v1691_v28 = vadd.f32 %v3566_v61, %v1690_v12  ;;  %v3575_v38 = vpop.eup %2314  ;;  %v1493_v24 = vsub.f32 %v3191_v55, %v3315_v40  ;;  %2324 = vpow2.f32 %v1588_v50 }
 0x314   : > { %3963 = vst [vmem:[#allocation28_spill] sm:$0xff] %v3575_v38  ;;  %v1592_v39 = vmul.f32 1.442695, %v3964_v23  ;;  %v3582_v30 = vpop.eup %2316  ;;  %v1604_v48 = vmul.f32 1.442695, %v1495_v20 }
 0x315   : > { %v1670_v58 = vadd.f32 %v3562_v47, %v1669_v62  ;;  %v1692_v45 = vadd.f32 %v3575_v38, %v1691_v28  ;;  %v3586_v42 = vpop.eup %2318  ;;  %v3965_v62 = vsub.f32 %v3924_v15, %v3315_v40  ;;  %v1497_v28 = vsub.f32 %v3201_v49, %v3315_v40 }
 0x316   : > { %v3595_v23 = vpop.eup %2320  ;;  %2326 = vpow2.f32 %v1592_v39 }
 0x317   : > { %v1671_v52 = vadd.f32 %v3571_v21, %v1670_v58  ;;  %v1596_v12 = vmul.f32 1.442695, %v3965_v62  ;;  %v1693_v13 = vadd.f32 %v3586_v42, %v1692_v45  ;;  %3966 = vst [vmem:[#allocation29_spill] sm:$0xff] %v3595_v23  ;;  %v1600_v58 = vmul.f32 1.442695, %v1493_v24  ;;  %v3600_v38 = vpop.eup %2322 }
 0x318   : > { %3967 = vst [vmem:[#allocation30_spill] sm:$0xff] %v3600_v38  ;;  %v1501_v24 = vsub.f32 %v3212_v34, %v3315_v40  ;;  %v1608_v49 = vmul.f32 1.442695, %v1497_v28  ;;  %v1505_v34 = vsub.f32 %v3223_v29, %v3315_v40 }
 0x319   : > { %v1672_v55 = vadd.f32 %v3582_v30, %v1671_v52  ;;  %v1694_v50 = vadd.f32 %v3595_v23, %v1693_v13  ;;  %2328 = vpow2.f32 %v1596_v12  ;;  %v1499_v52 = vsub.f32 %v3210_v11, %v3315_v40  ;;  %v3605_v62 = vpop.eup %2324 }
 0x31a   : > { %3968 = vst [vmem:[#allocation14_spill] sm:$0xff] %v3605_v62  ;;  %2330 = vpow2.f32 %v1600_v58 }
 0x31b   : > { %v1673_v61 = vrot.slane %v1672_v55, 4  ;;  %v1695_v45 = vadd.f32 %v3600_v38, %v1694_v50  ;;  %2332 = vpow2.f32 %v1604_v48  ;;  %v1612_v11 = vmul.f32 1.442695, %v1499_v52 }
 0x31c   : > { %v3610_v23 = vpop.eup %2326  ;;  %v1616_v50 = vmul.f32 1.442695, %v1501_v24  ;;  %2334 = vpow2.f32 %v1608_v49  ;;  %v1624_v24 = vmul.f32 1.442695, %v1505_v34 }
 0x31d   : > { %v1674_v15 = vadd.f32 %v1673_v61, %v1672_v55  ;;  %v1696_v13 = vadd.f32 %v3605_v62, %v1695_v45  ;;  %3969 = vst [vmem:[#allocation19_spill] sm:$0xff] %v3610_v23  ;;  %v1503_v61 = vsub.f32 %v3221_v54, %v3315_v40  ;;  %v1507_v54 = vsub.f32 %v3231_v17, %v3315_v40 }
 0x31e   : > { %2336 = vpow2.f32 %v1612_v11  ;;  %v3972_v17 = vsub.f32 %v3233_v27, %v3315_v40 }
 0x31f   : > { %v1675_v39 = vrot.slane %v1674_v15, 2  ;;  %v1697_v55 = vadd.f32 %v3610_v23, %v1696_v13  ;;  %v3615_v20 = vpop.eup %2328  ;;  %v1620_v52 = vmul.f32 1.442695, %v1503_v61  ;;  %2338 = vpow2.f32 %v1616_v50 }
 0x320   : > { %3970 = vst [vmem:[#allocation13_spill] sm:$0xff] %v3615_v20  ;;  %v3620_v28 = vpop.eup %2330  ;;  %v1628_v49 = vmul.f32 1.442695, %v1507_v54  ;;  %v3974_v23 = vsub.f32 %v3243_v33, %v3315_v40 }
 0x321   : > { %v1676_v12 = vadd.f32 %v1675_v39, %v1674_v15  ;;  %v1698_v58 = vadd.f32 %v3615_v20, %v1697_v55  ;;  %3971 = vst [vmem:[#allocation18_spill] sm:$0xff] %v3620_v28  ;;  %v3625_v45 = vpop.eup %2332 }
 0x322   : > { %v3628_v39 = vpop.eup %2334 }
 0x323   : > { %v1677_v38 = vrot.slane %v1676_v12, 1  ;;  %v1699_v48 = vadd.f32 %v3620_v28, %v1698_v58 }
 0x324   : > { %v3631_v55 = vpop.eup %2336 }
 0x325   : > { %v1678_v15 = vadd.f32 %v1677_v38, %v1676_v12  ;;  %v1700_v29 = vadd.f32 %v3625_v45, %v1699_v48  ;;  %v1632_v38 = vmul.f32 1.442695, %v3972_v17  ;;  %v3636_v61 = vpop.eup %2338 }
 0x327   : > { %2340 = vrcp.f32 %v1678_v15  ;;  %v1701_v13 = vadd.f32 %v3628_v39, %v1700_v29  ;;  %v1727_v27 = vand.u32 2147483648, %v1678_v15  ;;  %v1725_v29 = vand.u32 2147483647, %v1678_v15 }
 0x328   : > { %2342 = vpow2.f32 %v1620_v52  ;;  %vm1721_vm2 = vweird.f32 %v1678_v15 }
 0x329   : > { %2344 = vpow2.f32 %v1624_v24  ;;  %v1702_v12 = vadd.f32 %v3631_v55, %v1701_v13  ;;  %vm1726_vm4 = vcmp.eq.f32.partialorder %v1725_v29, 8.507059e+37 }
 0x32a   : > { %2346 = vpow2.f32 %v1628_v49 }
 0x32b   : > { %v1703_v34 = vadd.f32 %v3636_v61, %v1702_v12  ;;  %2348 = vpow2.f32 %v1632_v38  ;;  %v1728_v38 = vor.u32 1.1754944e-38, %v1727_v27 }
 0x32d   : > { %v2341_v11 = vpop.eup %2340 }
 0x32e   : > { %v1717_v50 = vmul.f32 %v2341_v11, %v1678_v15  ;;  %v3640_v58 = vpop.eup %2342  ;;  %vm1722_vm1 = vweird.f32 %v2341_v11 }
 0x32f   : > { %v1704_v52 = vadd.f32 %v3640_v58, %v1703_v34  ;;  %v3643_v48 = vpop.eup %2344  ;;  %vm1723_vm3 = vmor %vm1721_vm2, %vm1722_vm1 }
 0x330   : > { %v1718_v54 = vsub.f32 1.0, %v1717_v50  ;;  %v3646_v17 = vpop.eup %2346  ;;  %v3973_v50 = vsub.f32 %v3239_v31, %v3315_v40  ;;  %v3975_v40 = vld [vmem:[#allocation31_spill] sm:$0xff] }
 0x331   : > { %v1705_v13 = vadd.f32 %v3643_v48, %v1704_v52  ;;  %v3650_v28 = vpop.eup %2348 }
 0x332   : > { %v1719_v24 = vmul.f32 %v2341_v11, %v1718_v54  ;;  %v1636_v34 = vmul.f32 1.442695, %v3973_v50 }
 0x333   : > { %v1706_v12 = vadd.f32 %v3646_v17, %v1705_v13 }
 0x334   : > { %v1720_v49 = vadd.f32 %v2341_v11, %v1719_v24  ;;  %v1640_v24 = vmul.f32 1.442695, %v3974_v23  ;;  %2350 = vpow2.f32 %v1636_v34  ;;  %v3976_v23 = vld [vmem:[#allocation24_spill] sm:$0xff] }
 0x335   : > { %v1707_v20 = vadd.f32 %v3650_v28, %v1706_v12 }
 0x336   : > { %v1724_v54 = vsel %vm1723_vm3, %v2341_v11, %v1720_v49  ;;  %2352 = vpow2.f32 %v1640_v24  ;;  %v3978_v11 = vld [vmem:[#allocation11_spill] sm:$0xff]  ;;  %v3980_v24 = vld [vmem:[#allocation16_spill] sm:$0xff] }
 0x337   : > { %v1729_v52 = vsel %vm1726_vm4, %v1728_v38, %v1724_v54 }
 0x338   : > { %v1806_v15 = vmul.f32 %v3582_v30, %v1729_v52  ;;  %v1730_v13 = vmul.f32 %v3303_v10, %v1729_v52  ;;  %v1746_v62 = vmul.f32 %v3305_v60, %v1729_v52  ;;  %v1748_v27 = vmul.f32 %v3309_v18, %v1729_v52  ;;  %v3977_v60 = vld [vmem:[#allocation20_spill] sm:$0xff] }
 0x339   : > { %v1750_v31 = vmul.f32 %v3312_v51, %v1729_v52  ;;  %v1752_v33 = vmul.f32 %v3317_v3, %v1729_v52  ;;  %v1754_v30 = vmul.f32 %v3975_v40, %v1729_v52  ;;  %v1756_v10 = vmul.f32 %v3976_v23, %v1729_v52 }
 0x33a   : > { %1870 = vst [vmem:[%s3663_s13 + $0x1f0] sm:$0xff] %v1806_v15  ;;  %v1758_v18 = vmul.f32 %v3977_v60, %v1729_v52  ;;  %v1760_v29 = vmul.f32 %v3978_v11, %v1729_v52  ;;  %v1778_v49 = vmul.f32 %v3434_v22, %v1729_v52  ;;  %v1780_v12 = vmul.f32 %v3447_v2, %v1729_v52 }
 0x33b   : > { %1808 = vst [vmem:[%s3663_s13] sm:$0xff] %v1730_v13  ;;  %v1782_v51 = vmul.f32 %v3454_v4, %v1729_v52  ;;  %v1784_v3 = vmul.f32 %v3463_v59, %v1729_v52  ;;  %v1786_v38 = vmul.f32 %v3472_v53, %v1729_v52  ;;  %v1788_v50 = vmul.f32 %v3484_v19, %v1729_v52  ;;  %v3686_v4 = vpop.eup %2350 }
 0x33c   : > { %1810 = vst [vmem:[%s3663_s13 + $0x10] sm:$0xff] %v1746_v62  ;;  %v1790_v34 = vmul.f32 %v3496_v9, %v1729_v52  ;;  %v1792_v54 = vmul.f32 %v3508_v26, %v1729_v52  ;;  %v1794_v22 = vmul.f32 %v3520_v16, %v1729_v52  ;;  %v1796_v2 = vmul.f32 %v3532_v41, %v1729_v52  ;;  %v3979_v26 = vld [vmem:[#allocation12_spill] sm:$0xff]  ;;  %v2353_v62 = vpop.eup %2352 }
 0x33d   : > { %1812 = vst [vmem:[%s3663_s13 + $0x20] sm:$0xff] %v1748_v27  ;;  %v1798_v59 = vmul.f32 %v3544_v1, %v1729_v52  ;;  %v1800_v53 = vmul.f32 %v3553_v46, %v1729_v52  ;;  %v1802_v19 = vmul.f32 %v3562_v47, %v1729_v52  ;;  %v1804_v9 = vmul.f32 %v3571_v21, %v1729_v52  ;;  %v3981_v21 = vld [vmem:[#allocation22_spill] sm:$0xff]  ;;  %v3982_v27 = vld [vmem:[#allocation25_spill] sm:$0xff] }
 0x33e   : > { %1814 = vst [vmem:[%s3663_s13 + $0x30] sm:$0xff] %v1750_v31  ;;  %v1762_v16 = vmul.f32 %v3979_v26, %v1729_v52  ;;  %v1708_v41 = vadd.f32 %v3686_v4, %v1707_v20  ;;  %v1764_v15 = vmul.f32 %v3980_v24, %v1729_v52  ;;  %v1766_v1 = vmul.f32 %v3389_v14, %v1729_v52 }
 0x33f   : > { %1816 = vst [vmem:[%s3663_s13 + $0x40] sm:$0xff] %v1752_v33  ;;  %v1768_v47 = vmul.f32 %v3397_v25, %v1729_v52  ;;  %v1770_v20 = vmul.f32 %v3981_v21, %v1729_v52  ;;  %v1772_v31 = vmul.f32 %v3982_v27, %v1729_v52  ;;  %v1774_v14 = vmul.f32 %v3425_v63, %v1729_v52 }
 0x340   : > { %1818 = vst [vmem:[%s3663_s13 + $0x50] sm:$0xff] %v1754_v30  ;;  %v1709_v46 = vadd.f32 %v2353_v62, %v1708_v41  ;;  %v1776_v25 = vmul.f32 %v3429_v43, %v1729_v52 }
 0x341   : > { %1820 = vst [vmem:[%s3663_s13 + $0x60] sm:$0xff] %v1756_v10 }
 0x342   : > { %1822 = vst [vmem:[%s3663_s13 + $0x70] sm:$0xff] %v1758_v18  ;;  %v1710_v13 = vrot.slane %v1709_v46, 4 }
 0x343   : > { %1824 = vst [vmem:[%s3663_s13 + $0x80] sm:$0xff] %v1760_v29 }
 0x344   : > { %1826 = vst [vmem:[%s3663_s13 + $0x90] sm:$0xff] %v1762_v16  ;;  %v1711_v33 = vadd.f32 %v1710_v13, %v1709_v46  ;;  %v3988_v16 = vld [vmem:[#allocation14_spill] sm:$0xff] }
 0x345   : > { %1828 = vst [vmem:[%s3663_s13 + $0xa0] sm:$0xff] %v1764_v15 }
 0x346   : > { %1830 = vst [vmem:[%s3663_s13 + $0xb0] sm:$0xff] %v1766_v1  ;;  %v1712_v40 = vrot.slane %v1711_v33, 2  ;;  %v3991_v1 = vld [vmem:[#allocation18_spill] sm:$0xff] }
 0x347   : > { %1832 = vst [vmem:[%s3663_s13 + $0xc0] sm:$0xff] %v1768_v47 }
 0x348   : > { %1834 = vst [vmem:[%s3663_s13 + $0xd0] sm:$0xff] %v1770_v20  ;;  %v1713_v30 = vadd.f32 %v1712_v40, %v1711_v33 }
 0x349   : > { %1836 = vst [vmem:[%s3663_s13 + $0xe0] sm:$0xff] %v1772_v31 }
 0x34a   : > { %1838 = vst [vmem:[%s3663_s13 + $0xf0] sm:$0xff] %v1774_v14  ;;  %v1714_v63 = vrot.slane %v1713_v30, 1 }
 0x34b   : > { %1840 = vst [vmem:[%s3663_s13 + $0x100] sm:$0xff] %v1776_v25 }
 0x34c   : > { %1842 = vst [vmem:[%s3663_s13 + $0x110] sm:$0xff] %v1778_v49  ;;  %v1715_v23 = vadd.f32 %v1714_v63, %v1713_v30 }
 0x34d   : > { %1844 = vst [vmem:[%s3663_s13 + $0x120] sm:$0xff] %v1780_v12 }
 0x34e   : > { %1846 = vst [vmem:[%s3663_s13 + $0x130] sm:$0xff] %v1782_v51  ;;  %2354 = vrcp.f32 %v1715_v23  ;;  %v1742_v60 = vand.u32 2147483648, %v1715_v23  ;;  %v1740_v11 = vand.u32 2147483647, %v1715_v23  ;;  %vm1736_vm6 = vweird.f32 %v1715_v23 }
 0x34f   : > { %1848 = vst [vmem:[%s3663_s13 + $0x140] sm:$0xff] %v1784_v3 }
 0x350   : > { %1850 = vst [vmem:[%s3663_s13 + $0x150] sm:$0xff] %v1786_v38  ;;  %v1743_v49 = vor.u32 1.1754944e-38, %v1742_v60  ;;  %vm1741_vm8 = vcmp.eq.f32.partialorder %v1740_v11, 8.507059e+37 }
 0x351   : > { %1852 = vst [vmem:[%s3663_s13 + $0x160] sm:$0xff] %v1788_v50 }
 0x352   : > { %1854 = vst [vmem:[%s3663_s13 + $0x170] sm:$0xff] %v1790_v34 }
 0x353   : > { %1856 = vst [vmem:[%s3663_s13 + $0x180] sm:$0xff] %v1792_v54 }
 0x354   : > { %1858 = vst [vmem:[%s3663_s13 + $0x190] sm:$0xff] %v1794_v22  ;;  %v2355_v43 = vpop.eup %2354 }
 0x355   : > { %1860 = vst [vmem:[%s3663_s13 + $0x1a0] sm:$0xff] %v1796_v2  ;;  %v1732_v52 = vmul.f32 %v2355_v43, %v1715_v23  ;;  %vm1737_vm5 = vweird.f32 %v2355_v43 }
 0x356   : > { %1862 = vst [vmem:[%s3663_s13 + $0x1b0] sm:$0xff] %v1798_v59  ;;  %vm1738_vm7 = vmor %vm1736_vm6, %vm1737_vm5 }
 0x357   : > { %1864 = vst [vmem:[%s3663_s13 + $0x1c0] sm:$0xff] %v1800_v53  ;;  %v1733_v10 = vsub.f32 1.0, %v1732_v52 }
 0x358   : > { %1866 = vst [vmem:[%s3663_s13 + $0x1d0] sm:$0xff] %v1802_v19 }
 0x359   : > { %1868 = vst [vmem:[%s3663_s13 + $0x1e0] sm:$0xff] %v1804_v9  ;;  %v1734_v18 = vmul.f32 %v2355_v43, %v1733_v10  ;;  %v3987_v9 = vld [vmem:[#allocation30_spill] sm:$0xff] }
 0x35b   : > { %v1735_v29 = vadd.f32 %v2355_v43, %v1734_v18 }
 0x35d   : > { %v1739_v12 = vsel %vm1738_vm7, %v2355_v43, %v1735_v29 }
 0x35e   : > { %v1744_v51 = vsel %vm1741_vm8, %v1743_v49, %v1739_v12 }
 0x35f   : > { %v1807_v3 = vmul.f32 %v2353_v62, %v1744_v51  ;;  %v1745_v38 = vmul.f32 %v3438_v56, %v1744_v51  ;;  %v1747_v50 = vmul.f32 %v3443_v5, %v1744_v51  ;;  %v1749_v34 = vmul.f32 %v3452_v0, %v1744_v51  ;;  %v3989_v62 = vld [vmem:[#allocation19_spill] sm:$0xff] }
 0x360   : > { %v1751_v54 = vmul.f32 %v3458_v44, %v1744_v51  ;;  %v1753_v22 = vmul.f32 %v3467_v7, %v1744_v51  ;;  %v1755_v2 = vmul.f32 %v3479_v6, %v1744_v51  ;;  %v1757_v59 = vmul.f32 %v3491_v36, %v1744_v51 }
 0x361   : > { %1871 = vst [vmem:[%s3663_s13 + $0x1f8] sm:$0xff] %v1807_v3  ;;  %v1759_v56 = vmul.f32 %v3503_v35, %v1744_v51  ;;  %v1761_v5 = vmul.f32 %v3515_v32, %v1744_v51  ;;  %v1789_v0 = vmul.f32 %v3625_v45, %v1744_v51  ;;  %v1791_v44 = vmul.f32 %v3628_v39, %v1744_v51 }
 0x362   : > { %1809 = vst [vmem:[%s3663_s13 + $0x8] sm:$0xff] %v1745_v38  ;;  %v1793_v7 = vmul.f32 %v3631_v55, %v1744_v51  ;;  %v1795_v6 = vmul.f32 %v3636_v61, %v1744_v51  ;;  %v1797_v53 = vmul.f32 %v3640_v58, %v1744_v51  ;;  %v1799_v36 = vmul.f32 %v3643_v48, %v1744_v51  ;;  %v3983_v58 = vld [vmem:[#allocation26_spill] sm:$0xff] }
 0x363   : > { %1811 = vst [vmem:[%s3663_s13 + $0x18] sm:$0xff] %v1747_v50  ;;  %v1801_v35 = vmul.f32 %v3646_v17, %v1744_v51  ;;  %v1803_v32 = vmul.f32 %v3650_v28, %v1744_v51  ;;  %v1805_v45 = vmul.f32 %v3686_v4, %v1744_v51  ;;  %v1763_v39 = vmul.f32 %v3527_v37, %v1744_v51  ;;  %v3984_v28 = vld [vmem:[#allocation27_spill] sm:$0xff]  ;;  %v3985_v4 = vld [vmem:[#allocation28_spill] sm:$0xff] }
 0x364   : > { %1813 = vst [vmem:[%s3663_s13 + $0x28] sm:$0xff] %v1749_v34  ;;  %v1765_v55 = vmul.f32 %v3539_v57, %v1744_v51  ;;  %v1767_v61 = vmul.f32 %v3548_v8, %v1744_v51  ;;  %v1769_v48 = vmul.f32 %v3983_v58, %v1744_v51  ;;  %v1771_v17 = vmul.f32 %v3984_v28, %v1744_v51  ;;  %v3986_v8 = vld [vmem:[#allocation29_spill] sm:$0xff] }
 0x365   : > { %1815 = vst [vmem:[%s3663_s13 + $0x38] sm:$0xff] %v1751_v54  ;;  %v1773_v37 = vmul.f32 %v3985_v4, %v1744_v51  ;;  %v1775_v57 = vmul.f32 %v3586_v42, %v1744_v51  ;;  %v1777_v19 = vmul.f32 %v3986_v8, %v1744_v51  ;;  %v1779_v26 = vmul.f32 %v3987_v9, %v1744_v51  ;;  %v3990_v42 = vld [vmem:[#allocation13_spill] sm:$0xff] }
 0x366   : > { %1817 = vst [vmem:[%s3663_s13 + $0x48] sm:$0xff] %v1753_v22  ;;  %v1781_v41 = vmul.f32 %v3988_v16, %v1744_v51  ;;  %v1783_v24 = vmul.f32 %v3989_v62, %v1744_v51  ;;  %v1785_v15 = vmul.f32 %v3990_v42, %v1744_v51  ;;  %v1787_v46 = vmul.f32 %v3991_v1, %v1744_v51 }
 0x367   : > { %1819 = vst [vmem:[%s3663_s13 + $0x58] sm:$0xff] %v1755_v2 }
 0x368   : > { %1821 = vst [vmem:[%s3663_s13 + $0x68] sm:$0xff] %v1757_v59 }
 0x369   : > { %1823 = vst [vmem:[%s3663_s13 + $0x78] sm:$0xff] %v1759_v56 }
 0x36a   : > { %1825 = vst [vmem:[%s3663_s13 + $0x88] sm:$0xff] %v1761_v5 }
 0x36b   : > { %1827 = vst [vmem:[%s3663_s13 + $0x98] sm:$0xff] %v1763_v39 }
 0x36c   : > { %1829 = vst [vmem:[%s3663_s13 + $0xa8] sm:$0xff] %v1765_v55 }
 0x36d   : > { %1831 = vst [vmem:[%s3663_s13 + $0xb8] sm:$0xff] %v1767_v61 }
 0x36e   : > { %1833 = vst [vmem:[%s3663_s13 + $0xc8] sm:$0xff] %v1769_v48 }
 0x36f   : > { %1835 = vst [vmem:[%s3663_s13 + $0xd8] sm:$0xff] %v1771_v17 }
 0x370   : > { %1837 = vst [vmem:[%s3663_s13 + $0xe8] sm:$0xff] %v1773_v37 }
 0x371   : > { %1839 = vst [vmem:[%s3663_s13 + $0xf8] sm:$0xff] %v1775_v57 }
 0x372   : > { %1841 = vst [vmem:[%s3663_s13 + $0x108] sm:$0xff] %v1777_v19 }
 0x373   : > { %1843 = vst [vmem:[%s3663_s13 + $0x118] sm:$0xff] %v1779_v26 }
 0x374   : > { %1845 = vst [vmem:[%s3663_s13 + $0x128] sm:$0xff] %v1781_v41 }
 0x375   : > { %1847 = vst [vmem:[%s3663_s13 + $0x138] sm:$0xff] %v1783_v24 }
 0x376   : > { %1849 = vst [vmem:[%s3663_s13 + $0x148] sm:$0xff] %v1785_v15 }
 0x377   : > { %1851 = vst [vmem:[%s3663_s13 + $0x158] sm:$0xff] %v1787_v46 }
 0x378   : > { %1853 = vst [vmem:[%s3663_s13 + $0x168] sm:$0xff] %v1789_v0 }
 0x379   : > { %1855 = vst [vmem:[%s3663_s13 + $0x178] sm:$0xff] %v1791_v44 }
 0x37a   : > { %1857 = vst [vmem:[%s3663_s13 + $0x188] sm:$0xff] %v1793_v7 }
 0x37b   : > { %1859 = vst [vmem:[%s3663_s13 + $0x198] sm:$0xff] %v1795_v6 }
 0x37c   : > { %1861 = vst [vmem:[%s3663_s13 + $0x1a8] sm:$0xff] %v1797_v53 }
 0x37d   : > { %1863 = vst [vmem:[%s3663_s13 + $0x1b8] sm:$0xff] %v1799_v36 }
 0x37e   : > { %1865 = vst [vmem:[%s3663_s13 + $0x1c8] sm:$0xff] %v1801_v35 }
 0x37f   : > { %1867 = vst [vmem:[%s3663_s13 + $0x1d8] sm:$0xff] %v1803_v32 }
 0x380   : > { %1869 = vst [vmem:[%s3663_s13 + $0x1e8] sm:$0xff] %v1805_v45 }
 0x381   : > { %2383 = shalt.err (!%p2380_p8)
}
 0x382   : > { %s2447_s25 = smov 256   ;;  %s2448_s13 = smov 16  }
 0x383   : > { %2157 = dma.vmem_to_hbm [thread:$0]  (%p2530_p9), %s1888_s17, 8192, %s1890_s27, %s1873_s21, %s2447_s25, %s2447_s25, %s2448_s13  }
 0x384 PF: > { %s1904_s12 = sand.u32 1, %s2418_s18   ;;  %p2160_p10 = pnand %p1980_p12, %p2537_p11 }
 0x385   : > { %s1905_s11 = scalar_lea.sflag [#allocation4], %s1904_s12 }
 0x386   : > { %p2161_p13 = pneg %p2160_p10 }
 0x388   : > { %2413 = dma.done.wait (%p2161_p13), %s1905_s11, 8192  }
 0x389   : > { %2415 = vsyncadd (%p2161_p13), %s1905_s11, 4294959104  ;;  %s21_s23 = sadd.s32 1, %s2438_s23   ;;  %s3992_s18 = smov %s2422_s19 }
 0x38a   : > { %p18_p0 = scmp.ge.s32.totalorder %s21_s23, 4   ;;  %s3993_s19 = smov %s2426_s20 }
 0x38b   : > { %s3994_s20 = smov %s2535_s7  ;;  %s3995_s21 = smov %s2434_s22 }
 0x38c   : > { %s3996_s22 = smov %s3998_s26  ;;  %20 = sbr.rel (!%p18_p0) target bundleno = 6 (0x6), region = 90 }
 0x391   :  { %1911 = vsyncpa [#allocation3], 1 }
 0x392   :  { %1913 = vsyncpa [#allocation3 + $0x1], 1 }
 0x393   :  { %1914 = vsyncpa [#allocation4], 1 }
 0x394   :  { %1916 = vsyncpa [#allocation4 + $0x1], 1 }

</bundles_post_ra>
